<compile_context>
chip_gen: v6e
topology: v6e:2x2x1
jax: 0.10.0
libtpu: 0.0.40
codegen_flags: <defaults>
</compile_context>

<pallas_src>
import jax
import jax.numpy as jnp
from jax.experimental import pallas as pl
from jax.experimental.pallas import tpu as pltpu


# ----------------------------------------------------------------------------- helpers

def _round_up(x: int, m: int) -> int:
    return ((x + m - 1) // m) * m


def _sublane_multiple(dtype) -> int:
    """Minimum second-minor alignment for this dtype (8 f32, 16 bf16, 32 int8/fp8)."""
    itemsize = jnp.dtype(dtype).itemsize
    return max(8, 32 // max(1, itemsize))


def _vmem_budget_bytes() -> int:
    """Conservative per-call VMEM budget derived from the chip, with a safe fallback."""
    try:
        cap = int(pltpu.get_tpu_info().vmem_capacity_bytes)
    except Exception:
        cap = 64 * 1024 * 1024  # v7x-sized fallback: safe on every generation
    return min(int(cap * 3 // 4), 100 * 1024 * 1024)


def _tn_candidates(hidden: int):
    """Lane-aligned tile sizes that divide `hidden` exactly (never pad weights)."""
    cands = [d for d in range(128, hidden + 1, 128) if hidden % d == 0]
    if not cands or cands[-1] != hidden:
        cands.append(hidden)  # full-extent block is always layout-legal
    return cands


def _pick_tiles(m, dim, hidden, dtype, tm_req, tn_req, vmem_budget):
    """Choose (tm, tn) that divide the problem, respect dtype alignment and VMEM."""
    dsize = jnp.dtype(dtype).itemsize
    sub = _sublane_multiple(dtype)

    cands = _tn_candidates(hidden)
    fitting = [c for c in cands if c <= tn_req]
    tn = max(fitting) if fitting else cands[0]

    tm = _round_up(min(tm_req, _round_up(m, sub)), sub)

    def est(tm_, tn_):
        # double-buffered x, wg, wu, wd, out tiles + resident f32 accumulator
        dbl = 2 * (tm_ * dim + 2 * dim * tn_ + tn_ * dim + tm_ * dim) * dsize
        return dbl + tm_ * dim * 4

    # Shrink the hidden tile first (fewer/bigger token tiles keep MXU intensity),
    # then the token tile, until the pipeline fits the VMEM budget.
    while est(tm, tn) > vmem_budget and tn > cands[0]:
        tn = max(c for c in cands if c < tn)
    while est(tm, tn) > vmem_budget and tm > sub:
        tm = max(sub, _round_up(tm // 2, sub))
    return tm, tn


# ----------------------------------------------------------------------------- kernel

def _ffn_kernel(x_ref, wg_ref, wu_ref, wd_ref, o_ref, acc_ref):
    # x_ref  : (tm, dim)   token tile (block index constant across the hidden axis)
    # wg_ref : (dim, tn)   gate_proj weight tile
    # wu_ref : (dim, tn)   up_proj   weight tile
    # wd_ref : (tn, dim)   down_proj weight tile
    # o_ref  : (tm, dim)   output tile (written once, at the last hidden step)
    # acc_ref: (tm, dim)   f32 VMEM accumulator for the down-proj reduction
    h = pl.program_id(1)

    @pl.when(h == 0)
    def _():
        acc_ref[...] = jnp.zeros_like(acc_ref)

    x = x_ref[...]

    gate = jnp.dot(x, wg_ref[...], preferred_element_type=jnp.float32)
    up = jnp.dot(x, wu_ref[...], preferred_element_type=jnp.float32)

    # SiLU(gate) * up : VPU elementwise, sigmoid on the EUP slot.
    hidden = (gate * jax.nn.sigmoid(gate)) * up

    # Partial down projection for this hidden tile, accumulated in f32.
    # Keep as a single fused accumulate expression.
    acc_ref[...] += jnp.dot(hidden.astype(wd_ref.dtype), wd_ref[...],
                            preferred_element_type=jnp.float32)

    @pl.when(h == pl.num_programs(1) - 1)
    def _():
        o_ref[...] = acc_ref[...].astype(o_ref.dtype)


# ----------------------------------------------------------------------------- wrapper

def feed_forward(x, wg, wu, wd, *, tm=512, tn=1024, vmem_limit_bytes=None):
    """LLaMA SwiGLU FFN.

    x : [..., dim]
    wg: [dim, hidden]  gate_proj weight, pre-transposed vs PyTorch's [hidden, dim]
    wu: [dim, hidden]  up_proj weight,  pre-transposed
    wd: [hidden, dim]  down_proj weight, pre-transposed
    returns [..., dim]
    """
    orig_shape = x.shape
    dim = orig_shape[-1]
    hidden = wg.shape[1]
    assert wg.shape == (dim, hidden) and wu.shape == (dim, hidden)
    assert wd.shape == (hidden, dim)

    x2d = x.reshape(-1, dim)
    m = x2d.shape[0]

    budget = _vmem_budget_bytes() if vmem_limit_bytes is None else vmem_limit_bytes
    tm_eff, tn_eff = _pick_tiles(m, dim, hidden, x.dtype, tm, tn, budget)

    # Only the activations get (cheap) padding; weights are never touched.
    m_pad = _round_up(m, tm_eff)
    if m_pad != m:
        x2d = jnp.pad(x2d, ((0, m_pad - m), (0, 0)))

    n_h = hidden // tn_eff
    grid = (m_pad // tm_eff, n_h)

    out = pl.pallas_call(
        _ffn_kernel,
        out_shape=jax.ShapeDtypeStruct((m_pad, dim), x.dtype),
        grid_spec=pltpu.PrefetchScalarGridSpec(
            num_scalar_prefetch=0,
            grid=grid,
            in_specs=[
                pl.BlockSpec((tm_eff, dim), lambda i, h: (i, 0)),   # x tile
                pl.BlockSpec((dim, tn_eff), lambda i, h: (0, h)),   # gate weight tile
                pl.BlockSpec((dim, tn_eff), lambda i, h: (0, h)),   # up weight tile
                pl.BlockSpec((tn_eff, dim), lambda i, h: (h, 0)),   # down weight tile
            ],
            out_specs=pl.BlockSpec((tm_eff, dim), lambda i, h: (i, 0)),
            scratch_shapes=[pltpu.VMEM((tm_eff, dim), jnp.float32)],
        ),
        compiler_params=pltpu.CompilerParams(
            dimension_semantics=("parallel", "arbitrary"),
            vmem_limit_bytes=int(budget),
        ),
    )(x2d, wg, wu, wd)

    return out[:m].reshape(orig_shape)


def feed_forward_ref(x, wg, wu, wd):
    """Pure-JAX f32 reference (high-precision matmuls)."""
    hp = jax.lax.Precision.HIGHEST
    xf = x.astype(jnp.float32)
    gate = jnp.dot(xf, wg.astype(jnp.float32), precision=hp)
    up = jnp.dot(xf, wu.astype(jnp.float32), precision=hp)
    return jnp.dot(jax.nn.silu(gate) * up, wd.astype(jnp.float32), precision=hp)


# ----------------------------------------------------------------------------- demo

if __name__ == "__main__":
    # Small but tiling-exercising shapes: lane-aligned dim, multiple hidden tiles,
    # and a token count that is NOT a multiple of the token tile (tests M padding).
    batch, seq, dim, hidden_dim = 2, 96, 128, 512

    key = jax.random.PRNGKey(0)
    k_x, k_g, k_u, k_d = jax.random.split(key, 4)

    x = jax.random.normal(k_x, (batch, seq, dim), dtype=jnp.float32)
    # Weights stored pre-transposed ([in, out]) vs PyTorch Linear's [out, in];
    # this is a one-time parameter-layout transform, not a per-call cost.
    wg = jax.random.normal(k_g, (dim, hidden_dim), dtype=jnp.float32) * 0.02
    wu = jax.random.normal(k_u, (dim, hidden_dim), dtype=jnp.float32) * 0.02
    wd = jax.random.normal(k_d, (hidden_dim, dim), dtype=jnp.float32) * 0.02

    # --- f32 run with small explicit tiles: grid = (2 token tiles, 2 hidden tiles),
    #     exercises M padding and the hidden-axis accumulator. ---
    out = feed_forward(x, wg, wu, wd, tm=128, tn=256)
    out = jax.block_until_ready(out)
    assert out.shape == (batch, seq, dim)

    ref = feed_forward_ref(x.reshape(-1, dim), wg, wu, wd).reshape(batch, seq, dim)
    rel_err = float(jnp.max(jnp.abs(out.astype(jnp.float32) - ref))
                    / (jnp.max(jnp.abs(ref)) + 1e-6))
    assert rel_err < 5e-3, f"f32 mismatch vs reference (rel err {rel_err})"

    # --- bf16 run with device-derived default tiles (production-style path). ---
    xb, wgb, wub, wdb = (a.astype(jnp.bfloat16) for a in (x, wg, wu, wd))
    outb = jax.block_until_ready(feed_forward(xb, wgb, wub, wdb))
    refb = feed_forward_ref(xb.reshape(-1, dim), wgb, wub, wdb).reshape(batch, seq, dim)
    rel_err_b = float(jnp.max(jnp.abs(outb.astype(jnp.float32) - refb))
                      / (jnp.max(jnp.abs(refb)) + 1e-6))
    assert rel_err_b < 5e-2, f"bf16 mismatch vs reference (rel err {rel_err_b})"

    print("KERNEL_OK")
</pallas_src>

<mosaic_0001>
module attributes {stable_mosaic.version = 11 : i64} {
  func.func @_ffn_kernel(%arg0: i32, %arg1: i32, %arg2: memref<128x128xf32, #tpu.memory_space<vmem>>, %arg3: memref<128x256xf32, #tpu.memory_space<vmem>>, %arg4: memref<128x256xf32, #tpu.memory_space<vmem>>, %arg5: memref<256x128xf32, #tpu.memory_space<vmem>>, %arg6: memref<128x128xf32, #tpu.memory_space<vmem>>, %arg7: memref<128x128xf32, #tpu.memory_space<vmem>>) attributes {dimension_semantics = [#tpu.dimension_semantics<parallel>, #tpu.dimension_semantics<arbitrary>], iteration_bounds = array<i64: 2, 2>, scalar_prefetch = 0 : i64, scratch_operands = 1 : i64, tpu.core_type = #tpu.core_type<tc>, window_params = [{transform_indices = @transform_0, window_bounds = array<i64: 128, 128>}, {transform_indices = @transform_1, window_bounds = array<i64: 128, 256>}, {transform_indices = @transform_2, window_bounds = array<i64: 128, 256>}, {transform_indices = @transform_3, window_bounds = array<i64: 256, 128>}, {transform_indices = @transform_4, window_bounds = array<i64: 128, 128>}]} {
    %c0_i32 = arith.constant 0 : i32
    %0 = arith.cmpi eq, %arg1, %c0_i32 : i32
    %1 = arith.extui %0 : i1 to i32
    %c0_i32_0 = arith.constant 0 : i32
    %2 = arith.cmpi ne, %1, %c0_i32_0 : i32
    scf.if %2 {
      %cst_16 = arith.constant 0.000000e+00 : f32
      %23 = vector.broadcast %cst_16 : f32 to vector<128x128xf32>
      %c0_17 = arith.constant 0 : index
      %c0_18 = arith.constant 0 : index
      %24 = vector.load %arg7[%c0_17, %c0_18] : memref<128x128xf32, #tpu.memory_space<vmem>>, vector<128x128xf32>
      tpu.vector_store %arg7[%c0_17, %c0_18], %23 {strides = array<i32>} : memref<128x128xf32, #tpu.memory_space<vmem>>, vector<128x128xf32>,
    } else {
    }
    %c0 = arith.constant 0 : index
    %c0_1 = arith.constant 0 : index
    %3 = vector.load %arg2[%c0, %c0_1] : memref<128x128xf32, #tpu.memory_space<vmem>>, vector<128x128xf32>
    %c0_2 = arith.constant 0 : index
    %c0_3 = arith.constant 0 : index
    %4 = vector.load %arg3[%c0_2, %c0_3] : memref<128x256xf32, #tpu.memory_space<vmem>>, vector<128x256xf32>
    %cst = arith.constant dense<0.000000e+00> : vector<128x256xf32>
    %5 = tpu.matmul %3, %4, %cst {dimension_numbers = #tpu.dot_dimension_numbers<[1], [0], [0], [1], [0, 0, 1, 1], [], []>} : vector<128x128xf32>, vector<128x256xf32>, vector<128x256xf32> -> vector<128x256xf32>
    %c0_4 = arith.constant 0 : index
    %c0_5 = arith.constant 0 : index
    %6 = vector.load %arg4[%c0_4, %c0_5] : memref<128x256xf32, #tpu.memory_space<vmem>>, vector<128x256xf32>
    %cst_6 = arith.constant dense<0.000000e+00> : vector<128x256xf32>
    %7 = tpu.matmul %3, %6, %cst_6 {dimension_numbers = #tpu.dot_dimension_numbers<[1], [0], [0], [1], [0, 0, 1, 1], [], []>} : vector<128x128xf32>, vector<128x256xf32>, vector<128x256xf32> -> vector<128x256xf32>
    %8 = arith.negf %5 : vector<128x256xf32>
    %9 = math.exp %8 : vector<128x256xf32>
    %cst_7 = arith.constant 1.000000e+00 : f32
    %10 = vector.broadcast %cst_7 : f32 to vector<128x256xf32>
    %11 = arith.addf %10, %9 : vector<128x256xf32>
    %12 = arith.divf %10, %11 : vector<128x256xf32>
    %13 = arith.mulf %5, %12 : vector<128x256xf32>
    %14 = arith.mulf %13, %7 : vector<128x256xf32>
    %c0_8 = arith.constant 0 : index
    %c0_9 = arith.constant 0 : index
    %15 = vector.load %arg7[%c0_8, %c0_9] : memref<128x128xf32, #tpu.memory_space<vmem>>, vector<128x128xf32>
    %c0_10 = arith.constant 0 : index
    %c0_11 = arith.constant 0 : index
    %16 = vector.load %arg5[%c0_10, %c0_11] : memref<256x128xf32, #tpu.memory_space<vmem>>, vector<256x128xf32>
    %cst_12 = arith.constant dense<0.000000e+00> : vector<128x128xf32>
    %17 = tpu.matmul %14, %16, %cst_12 {dimension_numbers = #tpu.dot_dimension_numbers<[1], [0], [0], [1], [0, 0, 1, 1], [], []>} : vector<128x256xf32>, vector<256x128xf32>, vector<128x128xf32> -> vector<128x128xf32>
    %18 = arith.addf %15, %17 : vector<128x128xf32>
    %c0_13 = arith.constant 0 : index
    %c0_14 = arith.constant 0 : index
    %19 = vector.load %arg7[%c0_13, %c0_14] : memref<128x128xf32, #tpu.memory_space<vmem>>, vector<128x128xf32>
    tpu.vector_store %arg7[%c0_13, %c0_14], %18 {strides = array<i32>} : memref<128x128xf32, #tpu.memory_space<vmem>>, vector<128x128xf32>,
    %c1_i32 = arith.constant 1 : i32
    %20 = arith.cmpi eq, %arg1, %c1_i32 : i32
    %21 = arith.extui %20 : i1 to i32
    %c0_i32_15 = arith.constant 0 : i32
    %22 = arith.cmpi ne, %21, %c0_i32_15 : i32
    scf.if %22 {
      %c0_16 = arith.constant 0 : index
      %c0_17 = arith.constant 0 : index
      %23 = vector.load %arg7[%c0_16, %c0_17] : memref<128x128xf32, #tpu.memory_space<vmem>>, vector<128x128xf32>
      %c0_18 = arith.constant 0 : index
      %c0_19 = arith.constant 0 : index
      %24 = vector.load %arg6[%c0_18, %c0_19] : memref<128x128xf32, #tpu.memory_space<vmem>>, vector<128x128xf32>
      tpu.vector_store %arg6[%c0_18, %c0_19], %23 {strides = array<i32>} : memref<128x128xf32, #tpu.memory_space<vmem>>, vector<128x128xf32>,
    } else {
    }
    return
  }
  func.func @transform_0(%arg0: i32, %arg1: i32) -> (i32, i32) {
    %c0_i32 = arith.constant 0 : i32
    %c0_i32_0 = arith.constant 0 : i32
    return %arg0, %c0_i32 : i32, i32
  }
  func.func @transform_1(%arg0: i32, %arg1: i32) -> (i32, i32) {
    %c0_i32 = arith.constant 0 : i32
    %c0_i32_0 = arith.constant 0 : i32
    return %c0_i32, %arg1 : i32, i32
  }
  func.func @transform_2(%arg0: i32, %arg1: i32) -> (i32, i32) {
    %c0_i32 = arith.constant 0 : i32
    %c0_i32_0 = arith.constant 0 : i32
    return %c0_i32, %arg1 : i32, i32
  }
  func.func @transform_3(%arg0: i32, %arg1: i32) -> (i32, i32) {
    %c0_i32 = arith.constant 0 : i32
    %c0_i32_0 = arith.constant 0 : i32
    return %arg1, %c0_i32 : i32, i32
  }
  func.func @transform_4(%arg0: i32, %arg1: i32) -> (i32, i32) {
    %c0_i32 = arith.constant 0 : i32
    %c0_i32_0 = arith.constant 0 : i32
    return %arg0, %c0_i32 : i32, i32
  }
}

</mosaic_0001>

<bundles_post_ra>
// kernel: tpu_custom_call.1
= control target key start
LH: loop header
LB: loop body
LE: loop exit
PB: predicated region body
PF: predicated region fallthrough
CT: control target
= control target key end

     0   :  { %s2861_s0 = inlined_call_operand.hbm [shape: f32[256,128], index: 0, kind: input, shape index: {}]   ;;  %s2862_s1 = inlined_call_operand.hbm [shape: f32[128,512], index: 1, kind: input, shape index: {}]   ;;  %s2863_s2 = inlined_call_operand.hbm [shape: f32[128,512], index: 2, kind: input, shape index: {}]   ;;  %s2864_s3 = inlined_call_operand.hbm [shape: f32[512,128], index: 3, kind: input, shape index: {}]   ;;  %s2865_s4 = inlined_call_operand.hbm [shape: f32[256,128], index: 4, kind: output, shape index: {}]  }
   0x1   :  { %2883 = sst [smem:[#allocation26_spill]] %s2861_s0 }
   0x2   :  { %2884 = sst [smem:[#allocation27_spill]] %s2862_s1 }
   0x3   :  { %2885 = sst [smem:[#allocation28_spill]] %s2863_s2 }
   0x4   :  { %2886 = sst [smem:[#allocation29_spill]] %s2865_s4 }
   0x5   :  { %9 = vsyncpa [#allocation4], 0 }
   0x6   :  { %11 = vsyncpa [#allocation4 + $0x1], 0 }
   0x7   :  { %12 = vsyncpa [#allocation7], 0 }
   0x8   :  { %14 = vsyncpa [#allocation7 + $0x1], 0 }
   0x9   :  { %15 = vsyncpa [#allocation10], 0 }
   0xa   :  { %17 = vsyncpa [#allocation10 + $0x1], 0 }
   0xb   :  { %18 = vsyncpa [#allocation5], 0 }
   0xc   :  { %20 = vsyncpa [#allocation5 + $0x1], 0  ;;  %s2166_s15 = smov 0   ;;  %s2168_s16 = smov 0  }
   0xd   :  { %s2170_s17 = smov 0   ;;  %s2172_s18 = smov 0  }
   0xe   :  { %s2174_s19 = smov 0   ;;  %s2176_s20 = smov 0  }
   0xf   :  { %s2178_s21 = smov 0   ;;  %s2180_s22 = smov 0  }
  0x10   :  { %s2182_s23 = smov 0   ;;  %s2184_s24 = smov 0  }
  0x11   :  { %s2186_s25 = smov 0  }
  0x12 LB: > { %2887 = sst [smem:[#allocation16_spill]] %s2105_s20  ;;  %s35_s26 = sadd.s32 1, %s2117_s23  ;;  %s2125_s25 = sphi %s2186_s25, %s26_s25   ;;  %s2121_s24 = sphi %s2184_s24, %s2931_s24   ;;  %s2117_s23 = sphi %s2182_s23, %s2930_s23   ;;  %s2113_s22 = sphi %s2180_s22, %s2929_s22   ;;  %s2109_s21 = sphi %s2178_s21, %s2928_s21   ;;  %s2105_s20 = sphi %s2176_s20, %s2927_s20   ;;  %s2101_s19 = sphi %s2174_s19, %s2936_s19   ;;  %s2097_s18 = sphi %s2172_s18, %s2935_s18   ;;  %s2093_s17 = sphi %s2170_s17, %s2934_s17   ;;  %s2089_s16 = sphi %s2168_s16, %s2933_s16   ;;  %s2085_s15 = sphi %s2166_s15, %s2932_s15  }
  0x13   : > { %2888 = sst [smem:[#allocation17_spill]] %s2109_s21  ;;  %p53_p0 = scmp.eq.s32.totalorder %s2125_s25, 0 }
  0x14   : > { %2889 = sst [smem:[#allocation18_spill]] %s2113_s22  ;;  %p2223_p1 = scmp.ge.s32.totalorder %s35_s26, 2 }
  0x15   : > { %2890 = sst [smem:[#allocation19_spill]] %s2117_s23  ;;  %s71_s28 = sadd.s32 1, %s2093_s17 }
  0x16   : > { %2891 = sst [smem:[#allocation20_spill]] %s2121_s24  ;;  %p78_p2 = scmp.ne.s32.totalorder %s2093_s17, %s2089_s16 }
  0x17   : > { %p84_p3 = scmp.ne.s32.totalorder %s2089_s16, %s2085_s15  ;;  %s2938_s26 = smov (%p2223_p1, %s35_s26), 0 }
  0x18   : > { %2893 = sst [smem:[#allocation21_spill]] %s2938_s26  ;;  %p80_p4 = por %p78_p2, %p53_p0 }
  0x19   : > { %s68_s29 = ssub.s32 %s2117_s23, %s2938_s26  ;;  %p2870_p5 = scmp.lt.s32.totalorder %s2125_s25, 4 }
  0x1a   : > { %p69_p6 = scmp.eq.s32.totalorder %s68_s29, 0  ;;  %s207_s30 = sand.u32 1, %s2125_s25  }
  0x1b   : > { %s2866_s5 = sand.u32 1, %s2093_s17   ;;  %s1515_s8 = sshll.u32 %s2117_s23, 8 }
  0x1c   : > { %s2244_s6 = scalar_select %p69_p6, %s2093_s17, %s71_s28  }
  0x1d   : > { %s2248_s7 = sshll.u32 %s2866_s5, 8  ;;  %s2895_s1 = sld [smem:[#allocation27_spill]] }
  0x1e   : > { %2894 = sst [smem:[#allocation22_spill]] %s2244_s6  ;;  %s211_s12 = scalar_lea.vmem [#allocation6], %s2248_s7 }
  0x1f   : > { %s218_s13 = sshll.u32 %s211_s12, 4  ;;  %p2257_p7 = pnand %p2870_p5, %p80_p4  ;;  %s219_s13 = int_to_ptr.vmem [resolvable:$true] %s218_s13 }
  0x20   : > { %s2897_s2 = sld [smem:[#allocation28_spill]]  ;;  %s2266_s26 = scalar_lea.sflag [#allocation7], %s207_s30 }
  0x21   : > { %p2869_p8 = pneg %p2257_p7  ;;  %s1898_s9 = scalar_lea.vmem %s219_s13, 4096 }
  0x22   : > { %p1899_p9 = scmp.ne.s32.totalorder %s219_s13, %s1898_s9  ;;  %s2127_s10 = smov [#allocation6]  }
  0x23   : > { %s217_s11 = scalar_lea.hbm %s2895_s1, %s1515_s8  ;;  %s1903_s12 = sshll.u32 %s2127_s10, 4  ;;  %s1904_s12 = int_to_ptr.vmem [resolvable:$false] %s1903_s12 }
  0x24   : > { %p1901_p10 = pnand %p1899_p9, %p2869_p8  ;;  %s1905_s1 = scalar_lea.vmem %s1904_s12, 8192 }
  0x25   : > { %p1906_p12 = scmp.lt.s32.totalorder %s219_s13, %s1904_s12  ;;  %p1907_p13 = scmp.lt.s32.totalorder %s1905_s1, %s1898_s9 }
  0x26   : > { %s2264_s5 = scalar_lea.hbm %s2897_s2, %s1515_s8  ;;  %p1902_p11 = pneg %p1901_p10 }
  0x27   : > { %p1908_p2 = por %p1907_p13, %p1906_p12 }
  0x29   : > { %p1909_p4 = pnand %p1908_p2, %p1902_p11 }
  0x2b   : > { %1912 = shalt.err (!%p1909_p4)
}
  0x2c   : > { %s2868_s8 = smov 512   ;;  %s2871_s1 = smov 256  }
  0x2d   : > { %s2872_s30 = smov 16   ;;  %p1469_p6 = scmp.ge.s32.totalorder %s2125_s25, 1 }
  0x2e   : > { %1647 = dma.hbm_to_vmem [thread:$0]  (!%p2257_p7), %s217_s11, 4096, %s219_s13, %s2266_s26, %s2868_s8, %s2871_s1, %s2872_s30  }
  0x2f   : > { %p268_p9 = scmp.lt.s32.totalorder %s2125_s25, 5  ;;  %s2286_s29 = sadd.s32 4294967295, %s2125_s25  }
  0x30   : > { %s1454_s9 = sadd.s32 4294967294, %s2125_s25   ;;  %s38_s10 = sadd.s32 1, %s2121_s24 }
  0x31   : > { %p2281_p10 = pnand %p1469_p6, %p268_p9  ;;  %s2940_s10 = smov (!%p2223_p1, %s38_s10), %s2121_s24 }
  0x32   : > { %s45_s11 = sadd.s32 1, %s2105_s20  ;;  %p52_p11 = scmp.ne.s32.totalorder %s2105_s20, %s2101_s19 }
  0x33   : > { %p40_p12 = scmp.ge.s32.totalorder %s2940_s10, 2  ;;  %p58_p13 = scmp.ne.s32.totalorder %s2101_s19, %s2097_s18 }
  0x34   : > { %p2300_p2 = por %p53_p0, %p52_p11  ;;  %p59_p4 = scmp.eq.s32.totalorder %s2286_s29, 0 }
  0x35   : > { %s2942_s10 = smov (%p40_p12, %s2940_s10), 0  ;;  %p160_p0 = scmp.eq.s32.totalorder %s2286_s29, 3 }
  0x36   : > { %2900 = sst [smem:[#allocation23_spill]] %s2942_s10  ;;  %p2310_p1 = por %p59_p4, %p58_p13 }
  0x37   : > { %p2317_p6 = por %p84_p3, %p59_p4  ;;  %s42_s8 = ssub.s32 %s2121_s24, %s2942_s10 }
  0x38   : > { %p43_p9 = scmp.eq.s32.totalorder %s42_s8, 0  ;;  %p166_p8 = scmp.eq.s32.totalorder %s1454_s9, 3 }
  0x39   : > { %p2324_p5 = por %p160_p0, %p52_p11  ;;  %s186_s30 = sand.u32 1, %s2105_s20  }
  0x3a   : > { %s2330_s2 = scalar_select %p43_p9, %s2105_s20, %s45_s11  }
  0x3b   : > { %s2903_s1 = scalar_select %p2324_p5, 1, 0 }
  0x3c   : > { %2905 = sst [smem:[#allocation25_spill]] %s2330_s2  ;;  %p2335_p12 = por %p166_p8, %p58_p13 }
  0x3d   : > { %2904 = sst [smem:[#allocation24_spill]] %s2903_s1  ;;  %s1457_s15 = sshll.u32 %s186_s30, 7 }
  0x3e   : > { %s2906_s6 = scalar_select %p2335_p12, 1, 0 }
  0x3f   : > { %s1514_s4 = sshll.u32 %s2121_s24, 11  ;;  %s2907_s0 = sld [smem:[#allocation26_spill]] }
  0x40   : > { %s190_s8 = scalar_lea.vmem [#allocation3], %s1457_s15  ;;  %p2908_p3 = scmp.lt.s32.totalorder %s2125_s25, 4 }
  0x41   : > { %s197_s9 = sshll.u32 %s190_s8, 4  ;;  %s187_s11 = scalar_lea.sflag [#allocation4], %s186_s30  ;;  %s198_s9 = int_to_ptr.vmem [resolvable:$true] %s197_s9 }
  0x42   : > { %p2347_p11 = pnand %p2908_p3, %p2300_p2  ;;  %s1926_s2 = scalar_lea.vmem %s198_s9, 2048 }
  0x43   : > { %p1927_p13 = scmp.ne.s32.totalorder %s198_s9, %s1926_s2  ;;  %s2131_s24 = smov [#allocation3]  }
  0x44   : > { %p1915_p8 = pneg %p2347_p11  ;;  %s1931_s21 = sshll.u32 %s2131_s24, 4  ;;  %s1932_s21 = int_to_ptr.vmem [resolvable:$false] %s1931_s21 }
  0x45   : > { %s196_s10 = scalar_lea.hbm %s2907_s0, %s1514_s4  ;;  %s1933_s4 = scalar_lea.vmem %s1932_s21, 4096 }
  0x46   : > { %p1929_p4 = pnand %p1927_p13, %p1915_p8  ;;  %p1934_p9 = scmp.lt.s32.totalorder %s198_s9, %s1932_s21 }
  0x47   : > { %p1935_p12 = scmp.lt.s32.totalorder %s1933_s4, %s1926_s2 }
  0x48   : > { %p1930_p0 = pneg %p1929_p4 }
  0x49   : > { %p1936_p5 = por %p1935_p12, %p1934_p9 }
  0x4b   : > { %p1937_p2 = pnand %p1936_p5, %p1930_p0 }
  0x4d   : > { %1940 = shalt.err (!%p1937_p2)
}
  0x4e   : > { %s2879_s22 = smov 128   ;;  %s2880_s30 = smov 8  }
  0x4f   : > { %1644 = dma.hbm_to_vmem [thread:$0]  (!%p2347_p11), %s196_s10, 2048, %s198_s9, %s187_s11, %s2879_s22, %s2879_s22, %s2880_s30  }
  0x50   : > { %s232_s13 = scalar_lea.vmem [#allocation8], %s2248_s7  ;;  %s1517_s15 = sshll.u32 %s2117_s23, 12 }
  0x51   : > { %s239_s24 = sshll.u32 %s232_s13, 4  ;;  %p2910_p5 = pneg %p2257_p7  ;;  %s240_s24 = int_to_ptr.vmem [resolvable:$true] %s239_s24 }
  0x52   : > { %s1954_s8 = scalar_lea.vmem %s240_s24, 4096  ;;  %s2134_s2 = smov [#allocation8]  }
  0x53   : > { %p1955_p3 = scmp.ne.s32.totalorder %s240_s24, %s1954_s8  ;;  %s1959_s21 = sshll.u32 %s2134_s2, 4  ;;  %s1960_s21 = int_to_ptr.vmem [resolvable:$false] %s1959_s21 }
  0x54   : > { %s1961_s4 = scalar_lea.vmem %s1960_s21, 8192  ;;  %p1962_p13 = scmp.lt.s32.totalorder %s240_s24, %s1960_s21 }
  0x55   : > { %p1957_p12 = pnand %p1955_p3, %p2910_p5  ;;  %p1963_p4 = scmp.lt.s32.totalorder %s1961_s4, %s1954_s8 }
  0x57   : > { %p1958_p8 = pneg %p1957_p12  ;;  %p1964_p0 = por %p1963_p4, %p1962_p13 }
  0x59   : > { %p1965_p9 = pnand %p1964_p0, %p1958_p8 }
  0x5b   : > { %1968 = shalt.err (!%p1965_p9)
}
  0x5c   : > { %s2911_s1 = smov 16   ;;  %s2912_s10 = smov 256  }
  0x5d   : > { %s2913_s9 = smov 512   ;;  %s259_s2 = scalar_lea.hbm %s2864_s3, %s1517_s15 }
  0x5e   : > { %1650 = dma.hbm_to_vmem [thread:$0]  (!%p2257_p7), %s2264_s5, 4096, %s240_s24, %s2266_s26, %s2913_s9, %s2912_s10, %s2911_s1  }
  0x5f   : > { %s253_s21 = scalar_lea.vmem [#allocation9], %s2248_s7  ;;  %s2914_s4 = sand.u32 1, %s2093_s17  }
  0x60   : > { %s260_s8 = sshll.u32 %s253_s21, 4  ;;  %s250_s22 = scalar_lea.sflag [#allocation10], %s2914_s4  ;;  %s261_s8 = int_to_ptr.vmem [resolvable:$true] %s260_s8 }
  0x61   : > { %s1982_s30 = scalar_lea.vmem %s261_s8, 4096  ;;  %p2915_p2 = pmov %p2910_p5 }
  0x62   : > { %p1983_p11 = scmp.ne.s32.totalorder %s261_s8, %s1982_s30  ;;  %s2135_s0 = smov [#allocation9]  }
  0x63   : > { %s1987_s23 = sshll.u32 %s2135_s0, 4  ;;  %s1988_s23 = int_to_ptr.vmem [resolvable:$false] %s1987_s23 }
  0x64   : > { %p1985_p3 = pnand %p1983_p11, %p2915_p2  ;;  %s1989_s20 = scalar_lea.vmem %s1988_s23, 8192 }
  0x65   : > { %p1990_p12 = scmp.lt.s32.totalorder %s261_s8, %s1988_s23  ;;  %p1991_p8 = scmp.lt.s32.totalorder %s1989_s20, %s1982_s30 }
  0x66   : > { %p1986_p5 = pneg %p1985_p3 }
  0x67   : > { %p1992_p13 = por %p1991_p8, %p1990_p12 }
  0x69   : > { %p1993_p4 = pnand %p1992_p13, %p1986_p5 }
  0x6b   : > { %1996 = shalt.err (!%p1993_p4)
}
  0x6c   : > { %s2916_s26 = smov 8   ;;  %s2917_s5 = smov 128  }
  0x6d   : > { %1653 = dma.hbm_to_vmem [thread:$0]  (!%p2257_p7), %s259_s2, 4096, %s261_s8, %s250_s22, %s2917_s5, %s2917_s5, %s2916_s26  }
  0x6e   : > { %272 = sbr.rel (%p2281_p10) target bundleno = 723 (0x2d3), region = 36  ;;  %s2387_s7 = sand.u32 (!%p2281_p10), 1, %s2101_s19  }
  0x6f   : > { %s1470_s0 = sshll.u32 (!%p2281_p10), %s2387_s7, 7  ;;  %s275_s20 = scalar_lea.sflag (!%p2281_p10), [#allocation4], %s2387_s7 }
  0x70   : > { %s2391_s23 = scalar_lea.vmem (!%p2281_p10), [#allocation3], %s1470_s0 }
  0x73   : > { %2068 = dma.done.wait (%p2310_p1), %s275_s20, 2048  }
  0x74   : > { %2070 = vsyncadd (%p2310_p1), %s275_s20, 4294965248  ;;  %s283_s14 = sand.u32 1, %s2286_s29   ;;  %s285_s28 = sand.u32 1, %s2089_s16  }
  0x75   : > { %s1471_s22 = sshll.u32 %s285_s28, 8  ;;  %s284_s30 = scalar_lea.sflag [#allocation7], %s283_s14 }
  0x76   : > { %s2399_s24 = scalar_lea.vmem [#allocation6], %s1471_s22 }
  0x77   : > { %2072 = dma.done.wait (%p2317_p6), %s284_s30, 8192  }
  0x78   : > { %2074 = vsyncadd (%p2317_p6), %s284_s30, 4294959104  ;;  %s2405_s15 = scalar_lea.vmem [#allocation8], %s1471_s22  ;;  %s302_s1 = scalar_lea.sflag [#allocation10], %s285_s28 }
  0x79   : > { %s2407_s27 = scalar_lea.vmem [#allocation9], %s1471_s22 }
  0x7a   : > { %2076 = dma.done.wait (%p2317_p6), %s302_s1, 4096  }
  0x7b   : > { %2078 = vsyncadd (%p2317_p6), %s302_s1, 4294963200  ;;  %s2413_s29 = scalar_lea.vmem [#allocation11], %s1470_s0  ;;  %s2918_s10 = sld [smem:[#allocation17_spill]] }
  0x81   : > { %p1475_p7 = scmp.ne.s32.totalorder %s2918_s10, 0 }
  0x83   : > { %353 = sbr.rel (%p1475_p7) target bundleno = 145 (0x91), region = 56 }
  0x88   : > { %v2136_v0 = vmov 0.0  }
  0x89   : > { %354 = vst [vmem:[#allocation2 + $0x30] sm:$0xff] %v2136_v0  ;;  %355 = vst [vmem:[#allocation2] sm:$0xff] %v2136_v0 }
  0x8a   : > { %356 = vst [vmem:[#allocation2 + $0x58] sm:$0xff] %v2136_v0  ;;  %357 = vst [vmem:[#allocation2 + $0x18] sm:$0xff] %v2136_v0 }
  0x8b   : > { %358 = vst [vmem:[#allocation2 + $0x50] sm:$0xff] %v2136_v0  ;;  %359 = vst [vmem:[#allocation2 + $0x68] sm:$0xff] %v2136_v0 }
  0x8c   : > { %360 = vst [vmem:[#allocation2 + $0x8] sm:$0xff] %v2136_v0  ;;  %361 = vst [vmem:[#allocation2 + $0x48] sm:$0xff] %v2136_v0 }
  0x8d   : > { %362 = vst [vmem:[#allocation2 + $0x40] sm:$0xff] %v2136_v0  ;;  %363 = vst [vmem:[#allocation2 + $0x20] sm:$0xff] %v2136_v0 }
  0x8e   : > { %364 = vst [vmem:[#allocation2 + $0x10] sm:$0xff] %v2136_v0  ;;  %365 = vst [vmem:[#allocation2 + $0x38] sm:$0xff] %v2136_v0 }
  0x8f   : > { %366 = vst [vmem:[#allocation2 + $0x60] sm:$0xff] %v2136_v0  ;;  %367 = vst [vmem:[#allocation2 + $0x70] sm:$0xff] %v2136_v0 }
  0x90   : > { %368 = vst [vmem:[#allocation2 + $0x78] sm:$0xff] %v2136_v0  ;;  %369 = vst [vmem:[#allocation2 + $0x28] sm:$0xff] %v2136_v0 }
  0x91 PF: > { %v417_v1 = vld [vmem:[%s2399_s24 + $0xf8] sm:$0xff]  ;;  %v416_v2 = vld [vmem:[%s2399_s24 + $0xf0] sm:$0xff]  ;;  %v415_v3 = vld [vmem:[%s2399_s24 + $0xe8] sm:$0xff]  ;;  %v2137_v36 = vmov 0.0   ;;  %s2919_s12 = sld [smem:[#allocation17_spill]] }
  0x92   : > { %418 = vmatprep.subr.mxu0 %v417_v1  ;;  %1599 = vmatprep.subr.mxu1 %v417_v1  ;;  %v414_v4 = vld [vmem:[%s2399_s24 + $0xe0] sm:$0xff]  ;;  %v413_v5 = vld [vmem:[%s2399_s24 + $0xd8] sm:$0xff]  ;;  %v412_v6 = vld [vmem:[%s2399_s24 + $0xd0] sm:$0xff] }
  0x93   : > { %419 = vmatpush1.msra.mxu0 %v416_v2  ;;  %1615 = vmatpush1.msra.mxu1 %v416_v2  ;;  %v411_v7 = vld [vmem:[%s2399_s24 + $0xc8] sm:$0xff]  ;;  %v410_v8 = vld [vmem:[%s2399_s24 + $0xc0] sm:$0xff]  ;;  %v409_v9 = vld [vmem:[%s2399_s24 + $0xb8] sm:$0xff] }
  0x94   : > { %420 = vmatprep.subr.mxu0 %v415_v3  ;;  %1600 = vmatprep.subr.mxu1 %v415_v3  ;;  %v408_v10 = vld [vmem:[%s2399_s24 + $0xb0] sm:$0xff]  ;;  %v407_v11 = vld [vmem:[%s2399_s24 + $0xa8] sm:$0xff]  ;;  %v406_v12 = vld [vmem:[%s2399_s24 + $0xa0] sm:$0xff] }
  0x95   : > { %421 = vmatpush1.msra.mxu0 %v414_v4  ;;  %1616 = vmatpush1.msra.mxu1 %v414_v4  ;;  %v405_v13 = vld [vmem:[%s2399_s24 + $0x98] sm:$0xff]  ;;  %v404_v14 = vld [vmem:[%s2399_s24 + $0x90] sm:$0xff]  ;;  %v403_v15 = vld [vmem:[%s2399_s24 + $0x88] sm:$0xff] }
  0x96   : > { %422 = vmatprep.subr.mxu0 %v413_v5  ;;  %1601 = vmatprep.subr.mxu1 %v413_v5  ;;  %v402_v16 = vld [vmem:[%s2399_s24 + $0x80] sm:$0xff]  ;;  %v401_v17 = vld [vmem:[%s2399_s24 + $0x78] sm:$0xff]  ;;  %v400_v18 = vld [vmem:[%s2399_s24 + $0x70] sm:$0xff] }
  0x97   : > { %423 = vmatpush1.msra.mxu0 %v412_v6  ;;  %1617 = vmatpush1.msra.mxu1 %v412_v6  ;;  %v399_v19 = vld [vmem:[%s2399_s24 + $0x68] sm:$0xff]  ;;  %v398_v20 = vld [vmem:[%s2399_s24 + $0x60] sm:$0xff]  ;;  %v397_v21 = vld [vmem:[%s2399_s24 + $0x58] sm:$0xff]  ;;  %p1508_p10 = scmp.ne.s32.totalorder %s2919_s12, 1 }
  0x98   : > { %424 = vmatprep.subr.mxu0 %v411_v7  ;;  %1602 = vmatprep.subr.mxu1 %v411_v7  ;;  %v396_v22 = vld [vmem:[%s2399_s24 + $0x50] sm:$0xff]  ;;  %v395_v23 = vld [vmem:[%s2399_s24 + $0x48] sm:$0xff]  ;;  %v394_v24 = vld [vmem:[%s2399_s24 + $0x40] sm:$0xff] }
  0x99   : > { %425 = vmatpush1.msra.mxu0 %v410_v8  ;;  %1618 = vmatpush1.msra.mxu1 %v410_v8  ;;  %v393_v25 = vld [vmem:[%s2399_s24 + $0x38] sm:$0xff]  ;;  %v392_v26 = vld [vmem:[%s2399_s24 + $0x30] sm:$0xff]  ;;  %v391_v27 = vld [vmem:[%s2399_s24 + $0x28] sm:$0xff] }
  0x9a   : > { %426 = vmatprep.subr.mxu0 %v409_v9  ;;  %1603 = vmatprep.subr.mxu1 %v409_v9  ;;  %v390_v28 = vld [vmem:[%s2399_s24 + $0x20] sm:$0xff]  ;;  %v389_v29 = vld [vmem:[%s2399_s24 + $0x18] sm:$0xff]  ;;  %v388_v30 = vld [vmem:[%s2399_s24 + $0x10] sm:$0xff] }
  0x9b   : > { %427 = vmatpush1.msra.mxu0 %v408_v10  ;;  %1619 = vmatpush1.msra.mxu1 %v408_v10  ;;  %v387_v31 = vld [vmem:[%s2399_s24 + $0x8] sm:$0xff]  ;;  %v386_v32 = vld [vmem:[%s2399_s24] sm:$0xff]  ;;  %v610_v35 = vld [vmem:[%s2405_s15 + $0xf8] sm:$0xff] }
  0x9c   : > { %428 = vmatprep.subr.mxu0 %v407_v11  ;;  %1604 = vmatprep.subr.mxu1 %v407_v11  ;;  %v2449_v33 = vld [vmem:[%s2391_s23] sm:$0xff]  ;;  %v609_v37 = vld [vmem:[%s2405_s15 + $0xf0] sm:$0xff]  ;;  %v608_v38 = vld [vmem:[%s2405_s15 + $0xe8] sm:$0xff] }
  0x9d   : > { %429 = vmatpush1.msra.mxu0 %v406_v12  ;;  %1620 = vmatpush1.msra.mxu1 %v406_v12  ;;  %v2452_v34 = vld [vmem:[%s2391_s23 + $0x40] sm:$0xff]  ;;  %v2464_v40 = vld [vmem:[%s2391_s23 + $0x8] sm:$0xff]  ;;  %v606_v42 = vld [vmem:[%s2405_s15 + $0xd8] sm:$0xff] }
  0x9e   : > { %430 = vmatprep.subr.mxu0 %v405_v13  ;;  %1605 = vmatprep.subr.mxu1 %v405_v13  ;;  %v607_v39 = vld [vmem:[%s2405_s15 + $0xe0] sm:$0xff]  ;;  %v2468_v41 = vld [vmem:[%s2391_s23 + $0x48] sm:$0xff]  ;;  %v605_v43 = vld [vmem:[%s2405_s15 + $0xd0] sm:$0xff] }
  0x9f   : > { %431 = vmatpush1.msra.mxu0 %v404_v14  ;;  %1621 = vmatpush1.msra.mxu1 %v404_v14  ;;  %v604_v44 = vld [vmem:[%s2405_s15 + $0xc8] sm:$0xff]  ;;  %v603_v45 = vld [vmem:[%s2405_s15 + $0xc0] sm:$0xff]  ;;  %v2477_v46 = vld [vmem:[%s2391_s23 + $0x10] sm:$0xff] }
  0xa0   : > { %432 = vmatprep.subr.mxu0 %v403_v15  ;;  %1606 = vmatprep.subr.mxu1 %v403_v15  ;;  %v2481_v47 = vld [vmem:[%s2391_s23 + $0x50] sm:$0xff]  ;;  %v602_v48 = vld [vmem:[%s2405_s15 + $0xb8] sm:$0xff]  ;;  %v600_v50 = vld [vmem:[%s2405_s15 + $0xa8] sm:$0xff] }
  0xa1   : > { %433 = vmatpush1.msra.mxu0 %v402_v16  ;;  %1622 = vmatpush1.msra.mxu1 %v402_v16  ;;  %v601_v49 = vld [vmem:[%s2405_s15 + $0xb0] sm:$0xff]  ;;  %v599_v51 = vld [vmem:[%s2405_s15 + $0xa0] sm:$0xff]  ;;  %v2491_v52 = vld [vmem:[%s2391_s23 + $0x18] sm:$0xff] }
  0xa2   : > { %434 = vmatprep.subr.mxu0 %v401_v17  ;;  %1607 = vmatprep.subr.mxu1 %v401_v17  ;;  %v2495_v53 = vld [vmem:[%s2391_s23 + $0x58] sm:$0xff]  ;;  %v597_v55 = vld [vmem:[%s2405_s15 + $0x90] sm:$0xff]  ;;  %v596_v56 = vld [vmem:[%s2405_s15 + $0x88] sm:$0xff] }
  0xa3   : > { %435 = vmatpush1.msra.mxu0 %v400_v18  ;;  %1623 = vmatpush1.msra.mxu1 %v400_v18  ;;  %v598_v54 = vld [vmem:[%s2405_s15 + $0x98] sm:$0xff]  ;;  %v595_v57 = vld [vmem:[%s2405_s15 + $0x80] sm:$0xff]  ;;  %v593_v61 = vld [vmem:[%s2405_s15 + $0x70] sm:$0xff] }
  0xa4   : > { %436 = vmatprep.subr.mxu0 %v399_v19  ;;  %1608 = vmatprep.subr.mxu1 %v399_v19  ;;  %v2505_v58 = vld [vmem:[%s2391_s23 + $0x20] sm:$0xff]  ;;  %v594_v60 = vld [vmem:[%s2405_s15 + $0x78] sm:$0xff]  ;;  %v592_v62 = vld [vmem:[%s2405_s15 + $0x68] sm:$0xff] }
  0xa5   : > { %437 = vmatpush1.msra.mxu0 %v398_v20  ;;  %1624 = vmatpush1.msra.mxu1 %v398_v20  ;;  %v2509_v59 = vld [vmem:[%s2391_s23 + $0x60] sm:$0xff]  ;;  %v375_v0 = vld [vmem:[%s2391_s23 + $0x28] sm:$0xff]  ;;  %v590_v2 = vld [vmem:[%s2405_s15 + $0x58] sm:$0xff] }
  0xa6   : > { %438 = vmatprep.subr.mxu0 %v397_v21  ;;  %1609 = vmatprep.subr.mxu1 %v397_v21  ;;  %v591_v63 = vld [vmem:[%s2405_s15 + $0x60] sm:$0xff]  ;;  %v2521_v1 = vld [vmem:[%s2391_s23 + $0x68] sm:$0xff]  ;;  %v589_v3 = vld [vmem:[%s2405_s15 + $0x50] sm:$0xff] }
  0xa7   : > { %439 = vmatpush1.msra.mxu0 %v396_v22  ;;  %1625 = vmatpush1.msra.mxu1 %v396_v22  ;;  %v588_v4 = vld [vmem:[%s2405_s15 + $0x48] sm:$0xff]  ;;  %v587_v5 = vld [vmem:[%s2405_s15 + $0x40] sm:$0xff]  ;;  %v376_v6 = vld [vmem:[%s2391_s23 + $0x30] sm:$0xff] }
  0xa8   : > { %440 = vmatprep.subr.mxu0 %v395_v23  ;;  %1610 = vmatprep.subr.mxu1 %v395_v23  ;;  %v2532_v7 = vld [vmem:[%s2391_s23 + $0x70] sm:$0xff]  ;;  %v586_v8 = vld [vmem:[%s2405_s15 + $0x38] sm:$0xff]  ;;  %v584_v10 = vld [vmem:[%s2405_s15 + $0x28] sm:$0xff] }
  0xa9   : > { %441 = vmatpush1.msra.mxu0 %v394_v24  ;;  %1626 = vmatpush1.msra.mxu1 %v394_v24  ;;  %v585_v9 = vld [vmem:[%s2405_s15 + $0x30] sm:$0xff]  ;;  %v583_v11 = vld [vmem:[%s2405_s15 + $0x20] sm:$0xff]  ;;  %v377_v12 = vld [vmem:[%s2391_s23 + $0x38] sm:$0xff] }
  0xaa   : > { %442 = vmatprep.subr.mxu0 %v393_v25  ;;  %1611 = vmatprep.subr.mxu1 %v393_v25  ;;  %v385_v13 = vld [vmem:[%s2391_s23 + $0x78] sm:$0xff]  ;;  %v581_v15 = vld [vmem:[%s2405_s15 + $0x10] sm:$0xff]  ;;  %v580_v16 = vld [vmem:[%s2405_s15 + $0x8] sm:$0xff] }
  0xab   : > { %443 = vmatpush1.msra.mxu0 %v392_v26  ;;  %1627 = vmatpush1.msra.mxu1 %v392_v26  ;;  %v582_v14 = vld [vmem:[%s2405_s15 + $0x18] sm:$0xff]  ;;  %v579_v17 = vld [vmem:[%s2405_s15] sm:$0xff]  ;;  %v1074_v20 = vld [vmem:[%s2407_s27 + $0xf0] sm:$0xff] }
  0xac   : > { %444 = vmatprep.subr.mxu0 %v391_v27  ;;  %1612 = vmatprep.subr.mxu1 %v391_v27  ;;  %v1075_v18 = vld [vmem:[%s2407_s27 + $0xf8] sm:$0xff]  ;;  %v1058_v21 = vld [vmem:[%s2407_s27 + $0x70] sm:$0xff]  ;;  %v1073_v22 = vld [vmem:[%s2407_s27 + $0xe8] sm:$0xff] }
  0xad   : > { %445 = vmatpush1.msra.mxu0 %v390_v28  ;;  %1628 = vmatpush1.msra.mxu1 %v390_v28  ;;  %v1059_v19 = vld [vmem:[%s2407_s27 + $0x78] sm:$0xff]  ;;  %v1057_v23 = vld [vmem:[%s2407_s27 + $0x68] sm:$0xff]  ;;  %v1072_v24 = vld [vmem:[%s2407_s27 + $0xe0] sm:$0xff] }
  0xae   : > { %446 = vmatprep.subr.mxu0 %v389_v29  ;;  %1613 = vmatprep.subr.mxu1 %v389_v29  ;;  %v1056_v25 = vld [vmem:[%s2407_s27 + $0x60] sm:$0xff]  ;;  %v1071_v26 = vld [vmem:[%s2407_s27 + $0xd8] sm:$0xff]  ;;  %v1070_v28 = vld [vmem:[%s2407_s27 + $0xd0] sm:$0xff] }
  0xaf   : > { %447 = vmatpush1.msra.mxu0 %v388_v30  ;;  %1629 = vmatpush1.msra.mxu1 %v388_v30  ;;  %v1055_v27 = vld [vmem:[%s2407_s27 + $0x58] sm:$0xff]  ;;  %v1054_v29 = vld [vmem:[%s2407_s27 + $0x50] sm:$0xff]  ;;  %v1069_v30 = vld [vmem:[%s2407_s27 + $0xc8] sm:$0xff] }
  0xb0   : > { %448 = vmatprep.subr.mxu0 %v387_v31  ;;  %1614 = vmatprep.subr.mxu1 %v387_v31  ;;  %v1053_v31 = vld [vmem:[%s2407_s27 + $0x48] sm:$0xff] }
  0xb1   : > { %449 = vmatpush1.msra.mxu0 %v386_v32  ;;  %1630 = vmatpush1.msra.mxu1 %v386_v32  ;;  %v1068_v32 = vld [vmem:[%s2407_s27 + $0xc0] sm:$0xff] }
  0xb2   : > { %482 = vmatprep.mubr.f32.mxu0 %v2137_v36  ;;  %530 = vmatprep.mubr.f32.mxu1 %v2137_v36 }
  0xb3   : > { %483 = vmatmul.mubr.f32.vlgmr.msra.gmra.mxu0 %v2449_v33  ;;  %531 = vmatmul.mubr.f32.vlgmr.msra.gmra.mxu1 %v2452_v34 }
  0xb4   : > { %611 = vmatprep.subr.mxu1 %v610_v35  ;;  %488 = vmatprep.mubr.f32.mxu0 %v2137_v36  ;;  %v1051_v35 = vld [vmem:[%s2407_s27 + $0x38] sm:$0xff] }
  0xb5   : > { %612 = vmatpush1.msra.mxu1 %v609_v37  ;;  %536 = vmatprep.mubr.f32.mxu1 %v2137_v36  ;;  %v1050_v37 = vld [vmem:[%s2407_s27 + $0x30] sm:$0xff] }
  0xb6   : > { %613 = vmatprep.subr.mxu1 %v608_v38  ;;  %1519 = vmatprep.subr.mxu0 %v1075_v18  ;;  %v1065_v38 = vld [vmem:[%s2407_s27 + $0xa8] sm:$0xff] }
  0xb7   : > { %614 = vmatpush1.msra.mxu1 %v607_v39  ;;  %489 = vmatmul.mubr.f32.gmra.mxu0 %v2464_v40  ;;  %v1049_v39 = vld [vmem:[%s2407_s27 + $0x28] sm:$0xff] }
  0xb8   : > { %537 = vmatmul.mubr.f32.gmra.mxu1 %v2468_v41  ;;  %615 = vmatprep.subr.mxu1 %v606_v42  ;;  %v1063_v42 = vld [vmem:[%s2407_s27 + $0x98] sm:$0xff] }
  0xb9   : > { %616 = vmatpush1.msra.mxu1 %v605_v43  ;;  %494 = vmatprep.mubr.f32.mxu0 %v2137_v36  ;;  %v1047_v43 = vld [vmem:[%s2407_s27 + $0x18] sm:$0xff] }
  0xba   : > { %617 = vmatprep.subr.mxu1 %v604_v44  ;;  %542 = vmatprep.mubr.f32.mxu1 %v2137_v36  ;;  %v1062_v44 = vld [vmem:[%s2407_s27 + $0x90] sm:$0xff] }
  0xbb   : > { %618 = vmatpush1.msra.mxu1 %v603_v45  ;;  %495 = vmatmul.mubr.f32.gmra.mxu0 %v2477_v46  ;;  %v1046_v45 = vld [vmem:[%s2407_s27 + $0x10] sm:$0xff] }
  0xbc   : > { %543 = vmatmul.mubr.f32.gmra.mxu1 %v2481_v47  ;;  %619 = vmatprep.subr.mxu1 %v602_v48  ;;  %v1060_v48 = vld [vmem:[%s2407_s27 + $0x80] sm:$0xff] }
  0xbd   : > { %620 = vmatpush1.msra.mxu1 %v601_v49  ;;  %500 = vmatprep.mubr.f32.mxu0 %v2137_v36  ;;  %v1044_v49 = vld [vmem:[%s2407_s27] sm:$0xff] }
  0xbe   : > { %621 = vmatprep.subr.mxu1 %v600_v50  ;;  %548 = vmatprep.mubr.f32.mxu1 %v2137_v36 }
  0xbf   : > { %622 = vmatpush1.msra.mxu1 %v599_v51  ;;  %501 = vmatmul.mubr.f32.gmra.mxu0 %v2491_v52 }
  0xc0   : > { %549 = vmatmul.mubr.f32.gmra.mxu1 %v2495_v53  ;;  %623 = vmatprep.subr.mxu1 %v598_v54 }
  0xc1   : > { %624 = vmatpush1.msra.mxu1 %v597_v55  ;;  %506 = vmatprep.mubr.f32.mxu0 %v2137_v36 }
  0xc2   : > { %625 = vmatprep.subr.mxu1 %v596_v56  ;;  %554 = vmatprep.mubr.f32.mxu1 %v2137_v36 }
  0xc3   : > { %626 = vmatpush1.msra.mxu1 %v595_v57  ;;  %507 = vmatmul.mubr.f32.gmra.mxu0 %v2505_v58 }
  0xc4   : > { %555 = vmatmul.mubr.f32.gmra.mxu1 %v2509_v59  ;;  %627 = vmatprep.subr.mxu1 %v594_v60 }
  0xc5   : > { %628 = vmatpush1.msra.mxu1 %v593_v61  ;;  %512 = vmatprep.mubr.f32.mxu0 %v2137_v36 }
  0xc6   : > { %629 = vmatprep.subr.mxu1 %v592_v62  ;;  %560 = vmatprep.mubr.f32.mxu1 %v2137_v36 }
  0xc7   : > { %630 = vmatpush1.msra.mxu1 %v591_v63  ;;  %513 = vmatmul.mubr.f32.gmra.mxu0 %v375_v0 }
  0xc8   : > { %561 = vmatmul.mubr.f32.gmra.mxu1 %v2521_v1  ;;  %631 = vmatprep.subr.mxu1 %v590_v2 }
  0xc9   : > { %632 = vmatpush1.msra.mxu1 %v589_v3  ;;  %518 = vmatprep.mubr.f32.mxu0 %v2137_v36 }
  0xca   : > { %633 = vmatprep.subr.mxu1 %v588_v4  ;;  %566 = vmatprep.mubr.f32.mxu1 %v2137_v36 }
  0xcb   : > { %634 = vmatpush1.msra.mxu1 %v587_v5  ;;  %519 = vmatmul.mubr.f32.gmra.mxu0 %v376_v6 }
  0xcc   : > { %567 = vmatmul.mubr.f32.gmra.mxu1 %v2532_v7  ;;  %635 = vmatprep.subr.mxu1 %v586_v8 }
  0xcd   : > { %636 = vmatpush1.msra.mxu1 %v585_v9  ;;  %524 = vmatprep.mubr.f32.mxu0 %v2137_v36 }
  0xce   : > { %637 = vmatprep.subr.mxu1 %v584_v10  ;;  %572 = vmatprep.mubr.f32.mxu1 %v2137_v36 }
  0xcf   : > { %638 = vmatpush1.msra.mxu1 %v583_v11  ;;  %525 = vmatmul.mubr.f32.gmra.mxu0 %v377_v12 }
  0xd0   : > { %573 = vmatmul.mubr.f32.gmra.mxu1 %v385_v13  ;;  %639 = vmatprep.subr.mxu1 %v582_v14 }
  0xd1   : > { %640 = vmatpush1.msra.mxu1 %v581_v15  ;;  %675 = vmatprep.mubr.f32.mxu1 %v2137_v36 }
  0xd2   : > { %641 = vmatprep.subr.mxu1 %v580_v16  ;;  %1520 = vmatpush3.msra.mxu0 %v1059_v19 }
  0xd3   : > { %642 = vmatpush1.msra.mxu1 %v579_v17  ;;  %1521 = vmatprep.subr.mxu0 %v1074_v20 }
  0xd4   : > { %676 = vmatmul.mubr.f32.vlgmr.msra.gmra.mxu1 %v2449_v33  ;;  %1522 = vmatpush3.msra.mxu0 %v1058_v21  ;;  %v1052_v33 = vld [vmem:[%s2407_s27 + $0x40] sm:$0xff] }
  0xd5   : > { %681 = vmatprep.mubr.f32.mxu1 %v2137_v36  ;;  %1523 = vmatprep.subr.mxu0 %v1073_v22 }
  0xd6   : > { %1524 = vmatpush3.msra.mxu0 %v1057_v23 }
  0xd7   : > { %1525 = vmatprep.subr.mxu0 %v1072_v24 }
  0xd8   : > { %682 = vmatmul.mubr.f32.gmra.mxu1 %v2464_v40  ;;  %1526 = vmatpush3.msra.mxu0 %v1056_v25  ;;  %v1064_v40 = vld [vmem:[%s2407_s27 + $0xa0] sm:$0xff] }
  0xd9   : > { %687 = vmatprep.mubr.f32.mxu1 %v2137_v36  ;;  %1527 = vmatprep.subr.mxu0 %v1071_v26 }
  0xda   : > { %1528 = vmatpush3.msra.mxu0 %v1055_v27 }
  0xdb   : > { %1529 = vmatprep.subr.mxu0 %v1070_v28 }
  0xdc   : > { %688 = vmatmul.mubr.f32.gmra.mxu1 %v2477_v46  ;;  %1530 = vmatpush3.msra.mxu0 %v1054_v29  ;;  %v1061_v46 = vld [vmem:[%s2407_s27 + $0x88] sm:$0xff] }
  0xdd   : > { %693 = vmatprep.mubr.f32.mxu1 %v2137_v36  ;;  %1531 = vmatprep.subr.mxu0 %v1069_v30 }
  0xde   : > { %1532 = vmatpush3.msra.mxu0 %v1053_v31 }
  0xdf   : > { %1533 = vmatprep.subr.mxu0 %v1068_v32 }
  0xe0   : > { %694 = vmatmul.mubr.f32.gmra.mxu1 %v2491_v52  ;;  %1534 = vmatpush3.msra.mxu0 %v1052_v33 }
  0xe1   : > { %699 = vmatprep.mubr.f32.mxu1 %v2137_v36 }
  0xe4   : > { %700 = vmatmul.mubr.f32.gmra.mxu1 %v2505_v58 }
  0xe5   : > { %705 = vmatprep.mubr.f32.mxu1 %v2137_v36 }
  0xe8   : > { %706 = vmatmul.mubr.f32.gmra.mxu1 %v375_v0 }
  0xe9   : > { %711 = vmatprep.mubr.f32.mxu1 %v2137_v36 }
  0xec   : > { %712 = vmatmul.mubr.f32.gmra.mxu1 %v376_v6 }
  0xed   : > { %717 = vmatprep.mubr.f32.mxu1 %v2137_v36 }
  0xf0   : > { %718 = vmatmul.mubr.f32.gmra.mxu1 %v377_v12 }
  0xf1   : > { %723 = vmatprep.mubr.f32.mxu1 %v2137_v36 }
  0xf4   : > { %724 = vmatmul.mubr.f32.gmra.mxu1 %v2452_v34  ;;  %v1067_v34 = vld [vmem:[%s2407_s27 + $0xb8] sm:$0xff] }
  0xf5   : > { %729 = vmatprep.mubr.f32.mxu1 %v2137_v36  ;;  %1535 = vmatprep.subr.mxu0 %v1067_v34 }
  0xf6   : > { %1536 = vmatpush3.msra.mxu0 %v1051_v35 }
  0xf8   : > { %730 = vmatmul.mubr.f32.gmra.mxu1 %v2468_v41  ;;  %v1048_v41 = vld [vmem:[%s2407_s27 + $0x20] sm:$0xff] }
  0xf9   : > { %735 = vmatprep.mubr.f32.mxu1 %v2137_v36 }
  0xfc   : > { %736 = vmatmul.mubr.f32.gmra.mxu1 %v2481_v47  ;;  %v1045_v47 = vld [vmem:[%s2407_s27 + $0x8] sm:$0xff] }
  0xfd   : > { %741 = vmatprep.mubr.f32.mxu1 %v2137_v36 }
 0x100   : > { %742 = vmatmul.mubr.f32.gmra.mxu1 %v2495_v53 }
 0x101   : > { %747 = vmatprep.mubr.f32.mxu1 %v2137_v36 }
 0x104   : > { %748 = vmatmul.mubr.f32.gmra.mxu1 %v2509_v59 }
 0x105   : > { %753 = vmatprep.mubr.f32.mxu1 %v2137_v36 }
 0x108   : > { %754 = vmatmul.mubr.f32.gmra.mxu1 %v2521_v1 }
 0x109   : > { %759 = vmatprep.mubr.f32.mxu1 %v2137_v36 }
 0x10c   : > { %760 = vmatmul.mubr.f32.gmra.mxu1 %v2532_v7 }
 0x10d   : > { %765 = vmatprep.mubr.f32.mxu1 %v2137_v36  ;;  %v1066_v36 = vld [vmem:[%s2407_s27 + $0xb0] sm:$0xff] }
 0x10e   : > { %1537 = vmatprep.subr.mxu0 %v1066_v36 }
 0x10f   : > { %1538 = vmatpush3.msra.mxu0 %v1050_v37 }
 0x110   : > { %766 = vmatmul.mubr.f32.gmra.mxu1 %v385_v13  ;;  %1539 = vmatprep.subr.mxu0 %v1065_v38 }
 0x111   : > { %1540 = vmatpush3.msra.mxu0 %v1049_v39 }
 0x112   : > { %1541 = vmatprep.subr.mxu0 %v1064_v40 }
 0x113   : > { %1542 = vmatpush3.msra.mxu0 %v1048_v41 }
 0x114   : > { %1543 = vmatprep.subr.mxu0 %v1063_v42 }
 0x115   : > { %1544 = vmatpush3.msra.mxu0 %v1047_v43 }
 0x116   : > { %1545 = vmatprep.subr.mxu0 %v1062_v44 }
 0x117   : > { %1546 = vmatpush3.msra.mxu0 %v1046_v45 }
 0x118   : > { %1547 = vmatprep.subr.mxu0 %v1061_v46 }
 0x119   : > { %1548 = vmatpush3.msra.mxu0 %v1045_v47 }
 0x11a   : > { %1549 = vmatprep.subr.mxu0 %v1060_v48 }
 0x11b   : > { %1550 = vmatpush3.msra.mxu0 %v1044_v49 }
 0x173   : > { %v2608_v50 = vpop.f32.mrf.mxu0  ;;  %v2610_v51 = vpop.f32.mrf.mxu1 }
 0x174   : > { %v1476_v52 = vmul.f32 -1.442695, %v2608_v50  ;;  %v1492_v41 = vmul.f32 -1.442695, %v2610_v51 }
 0x175   : > { %v2613_v53 = vpop.f32.mrf.mxu0  ;;  %v2615_v54 = vpop.f32.mrf.mxu1 }
 0x176   : > { %1757 = vpow2.f32 %v1476_v52  ;;  %v1477_v55 = vmul.f32 -1.442695, %v2613_v53 }
 0x177   : > { %v2618_v56 = vpop.f32.mrf.mxu0 }
 0x178   : > { %1759 = vpow2.f32 %v1477_v55  ;;  %v1478_v57 = vmul.f32 -1.442695, %v2618_v56  ;;  %v2621_v58 = vpop.f32.mrf.mxu1  ;;  %v1493_v55 = vmul.f32 -1.442695, %v2615_v54 }
 0x179   : > { %v2623_v59 = vpop.f32.mrf.mxu0 }
 0x17a   : > { %1761 = vpow2.f32 %v1478_v57  ;;  %v1479_v60 = vmul.f32 -1.442695, %v2623_v59  ;;  %v2626_v61 = vpop.f32.mrf.mxu1 }
 0x17b   : > { %v2628_v62 = vpop.f32.mrf.mxu0 }
 0x17c   : > { %1763 = vpow2.f32 %v1479_v60  ;;  %v1480_v63 = vmul.f32 -1.442695, %v2628_v62  ;;  %v2631_v0 = vpop.f32.mrf.mxu1 }
 0x17d   : > { %v2633_v1 = vpop.f32.mrf.mxu0 }
 0x17e   : > { %1765 = vpow2.f32 %v1480_v63  ;;  %v1481_v2 = vmul.f32 -1.442695, %v2633_v1  ;;  %v2636_v3 = vpop.f32.mrf.mxu1 }
 0x17f   : > { %v2638_v4 = vpop.f32.mrf.mxu0 }
 0x180   : > { %1767 = vpow2.f32 %v1481_v2  ;;  %v1482_v5 = vmul.f32 -1.442695, %v2638_v4  ;;  %v2641_v6 = vpop.f32.mrf.mxu1 }
 0x181   : > { %v2643_v7 = vpop.f32.mrf.mxu0 }
 0x182   : > { %1769 = vpow2.f32 %v1482_v5  ;;  %v1483_v8 = vmul.f32 -1.442695, %v2643_v7  ;;  %v2646_v9 = vpop.f32.mrf.mxu1 }
 0x183   : > { %v1758_v10 = vpop.eup %1757  ;;  %v2648_v11 = vpop.f32.mrf.mxu0 }
 0x184   : > { %v868_v12 = vadd.f32 1.0, %v1758_v10  ;;  %1771 = vpow2.f32 %v1483_v8  ;;  %v2650_v13 = vpop.f32.mrf.mxu1  ;;  %v1484_v38 = vmul.f32 -1.442695, %v2648_v11 }
 0x185   : > { %v1760_v14 = vpop.eup %1759  ;;  %v2652_v15 = vpop.f32.mrf.mxu0 }
 0x186   : > { %1773 = vrcp.f32 %v868_v12  ;;  %v869_v16 = vadd.f32 1.0, %v1760_v14  ;;  %v2654_v17 = vpop.f32.mrf.mxu1  ;;  %v1485_v42 = vmul.f32 -1.442695, %v2652_v15 }
 0x187   : > { %v1762_v18 = vpop.eup %1761  ;;  %v2658_v22 = vpop.f32.mrf.mxu0 }
 0x188   : > { %1775 = vrcp.f32 %v869_v16  ;;  %v870_v19 = vadd.f32 1.0, %v1762_v18  ;;  %v2656_v20 = vpop.f32.mrf.mxu1  ;;  %v1486_v48 = vmul.f32 -1.442695, %v2658_v22  ;;  %v1494_v16 = vmul.f32 -1.442695, %v2621_v58 }
 0x189   : > { %v1764_v21 = vpop.eup %1763  ;;  %v2664_v29 = vpop.f32.mrf.mxu0 }
 0x18a   : > { %1777 = vrcp.f32 %v870_v19  ;;  %v871_v23 = vadd.f32 1.0, %v1764_v21  ;;  %v2660_v24 = vpop.f32.mrf.mxu1  ;;  %v1487_v57 = vmul.f32 -1.442695, %v2664_v29 }
 0x18b   : > { %v1766_v25 = vpop.eup %1765  ;;  %v2670_v36 = vpop.f32.mrf.mxu0 }
 0x18c   : > { %1779 = vrcp.f32 %v871_v23  ;;  %v872_v26 = vadd.f32 1.0, %v1766_v25  ;;  %v2662_v27 = vpop.f32.mrf.mxu1  ;;  %v1488_v10 = vmul.f32 -1.442695, %v2670_v36  ;;  %v1495_v23 = vmul.f32 -1.442695, %v2626_v61 }
 0x18d   : > { %v1768_v28 = vpop.eup %1767  ;;  %v2678_v46 = vpop.f32.mrf.mxu0 }
 0x18e   : > { %1781 = vrcp.f32 %v872_v26  ;;  %v873_v30 = vadd.f32 1.0, %v1768_v28  ;;  %v2666_v31 = vpop.f32.mrf.mxu1  ;;  %v1489_v18 = vmul.f32 -1.442695, %v2678_v46 }
 0x18f   : > { %v1770_v32 = vpop.eup %1769  ;;  %v2685_v5 = vpop.f32.mrf.mxu0 }
 0x190   : > { %1783 = vrcp.f32 %v873_v30  ;;  %v874_v33 = vadd.f32 1.0, %v1770_v32  ;;  %v2668_v34 = vpop.f32.mrf.mxu1  ;;  %v1490_v30 = vmul.f32 -1.442695, %v2685_v5 }
 0x191   : > { %v1772_v35 = vpop.eup %1771  ;;  %v2693_v25 = vpop.f32.mrf.mxu0 }
 0x192   : > { %1785 = vrcp.f32 %v874_v33  ;;  %v875_v37 = vadd.f32 1.0, %v1772_v35  ;;  %v2673_v39 = vpop.f32.mrf.mxu1  ;;  %v1496_v35 = vmul.f32 -1.442695, %v2631_v0 }
 0x193   : > { %v1774_v40 = vpop.eup %1773 }
 0x194   : > { %1787 = vrcp.f32 %v875_v37  ;;  %v677_v43 = vpop.f32.mrf.mxu1  ;;  %v964_v45 = vmul.f32 %v1774_v40, %v2608_v50  ;;  %v1491_v37 = vmul.f32 -1.442695, %v2693_v25 }
 0x195   : > { %v1776_v44 = vpop.eup %1775  ;;  %1789 = vpow2.f32 %v1484_v38 }
 0x196   : > { %v965_v47 = vmul.f32 %v1776_v44, %v2613_v53  ;;  %v679_v49 = vpop.f32.mrf.mxu1  ;;  %1791 = vpow2.f32 %v1492_v41  ;;  %v996_v8 = vmul.f32 %v964_v45, %v677_v43  ;;  %v1497_v41 = vmul.f32 -1.442695, %v2636_v3 }
 0x197   : > { %v1778_v52 = vpop.eup %1777  ;;  %1793 = vpow2.f32 %v1485_v42 }
 0x198   : > { %v997_v60 = vmul.f32 %v965_v47, %v679_v49  ;;  %v683_v63 = vpop.f32.mrf.mxu1  ;;  %v966_v50 = vmul.f32 %v1778_v52, %v2618_v56  ;;  %1795 = vpow2.f32 %v1486_v48  ;;  %v1498_v47 = vmul.f32 -1.442695, %v2641_v6 }
 0x199   : > { %v1780_v2 = vpop.eup %1779  ;;  %1797 = vpow2.f32 %v1493_v55 }
 0x19a   : > { %v967_v53 = vmul.f32 %v1780_v2, %v2623_v59  ;;  %v685_v12 = vpop.f32.mrf.mxu1  ;;  %1140 = vmatprep.mubr.f32.mxu0 %v997_v60  ;;  %1799 = vpow2.f32 %v1487_v57  ;;  %v998_v26 = vmul.f32 %v966_v50, %v683_v63 }
 0x19b   : > { %v1782_v14 = vpop.eup %1781  ;;  %1141 = vmatmul.mubr.f32.vlgmr.msra.gmra.mxu0 %v996_v8  ;;  %1801 = vpow2.f32 %v1488_v10 }
 0x19c   : > { %v999_v19 = vmul.f32 %v967_v53, %v685_v12  ;;  %v689_v56 = vpop.f32.mrf.mxu1  ;;  %v968_v59 = vmul.f32 %v1782_v14, %v2628_v62  ;;  %1803 = vpow2.f32 %v1494_v16  ;;  %v1501_v14 = vmul.f32 -1.442695, %v2654_v17 }
 0x19d   : > { %v1784_v21 = vpop.eup %1783  ;;  %1805 = vpow2.f32 %v1489_v18 }
 0x19e   : > { %v969_v28 = vmul.f32 %v1784_v21, %v2633_v1  ;;  %v691_v32 = vpop.f32.mrf.mxu1  ;;  %1145 = vmatprep.mubr.f32.mxu0 %v999_v19  ;;  %1807 = vpow2.f32 %v1495_v23  ;;  %v1000_v42 = vmul.f32 %v968_v59, %v689_v56 }
 0x19f   : > { %v1786_v33 = vpop.eup %1785  ;;  %1146 = vmatmul.mubr.f32.gmra.mxu0 %v998_v26  ;;  %1809 = vpow2.f32 %v1490_v30 }
 0x1a0   : > { %v1001_v38 = vmul.f32 %v969_v28, %v691_v32  ;;  %v695_v62 = vpop.f32.mrf.mxu1  ;;  %v970_v1 = vmul.f32 %v1786_v33, %v2638_v4  ;;  %1811 = vpow2.f32 %v1496_v35  ;;  %v1499_v4 = vmul.f32 -1.442695, %v2646_v9 }
 0x1a1   : > { %v1788_v40 = vpop.eup %1787  ;;  %1813 = vpow2.f32 %v1491_v37  ;;  %v1503_v28 = vmul.f32 -1.442695, %v2660_v24  ;;  %v1500_v37 = vmul.f32 -1.442695, %v2650_v13 }
 0x1a2   : > { %v971_v43 = vmul.f32 %v1788_v40, %v2643_v7  ;;  %v697_v44 = vpop.f32.mrf.mxu1  ;;  %1150 = vmatprep.mubr.f32.mxu0 %v1001_v38  ;;  %v1790_v45 = vpop.eup %1789  ;;  %1815 = vpow2.f32 %v1497_v41  ;;  %v1002_v60 = vmul.f32 %v970_v1, %v695_v62 }
 0x1a3   : > { %1151 = vmatmul.mubr.f32.gmra.mxu0 %v1000_v42  ;;  %v1792_v48 = vpop.eup %1791  ;;  %v876_v49 = vadd.f32 1.0, %v1790_v45 }
 0x1a4   : > { %v1003_v52 = vmul.f32 %v971_v43, %v697_v44  ;;  %v2703_v55 = vpop.f32.mrf.mxu1  ;;  %v1794_v57 = vpop.eup %1793  ;;  %v884_v50 = vadd.f32 1.0, %v1792_v48  ;;  %v1505_v43 = vmul.f32 -1.442695, %v2666_v31  ;;  %v1502_v48 = vmul.f32 -1.442695, %v2656_v20 }
 0x1a5   : > { %1817 = vrcp.f32 %v876_v49  ;;  %v877_v7 = vadd.f32 1.0, %v1794_v57  ;;  %v1796_v2 = vpop.eup %1795 }
 0x1a6   : > { %v2706_v63 = vpop.f32.mrf.mxu1  ;;  %1155 = vmatprep.mubr.f32.mxu0 %v1003_v52  ;;  %1819 = vpow2.f32 %v1498_v47  ;;  %v1798_v8 = vpop.eup %1797  ;;  %v878_v53 = vadd.f32 1.0, %v1796_v2 }
 0x1a7   : > { %1156 = vmatmul.mubr.f32.gmra.mxu0 %v1002_v60  ;;  %1821 = vrcp.f32 %v877_v7  ;;  %v1800_v12 = vpop.eup %1799  ;;  %v885_v56 = vadd.f32 1.0, %v1798_v8  ;;  %v1507_v8 = vmul.f32 -1.442695, %v2673_v39 }
 0x1a8   : > { %v2708_v10 = vpop.f32.mrf.mxu1  ;;  %1823 = vpow2.f32 %v1499_v4  ;;  %v879_v16 = vadd.f32 1.0, %v1800_v12  ;;  %v1802_v19 = vpop.eup %1801 }
 0x1a9   : > { %1825 = vrcp.f32 %v878_v53  ;;  %v1804_v21 = vpop.eup %1803  ;;  %v880_v23 = vadd.f32 1.0, %v1802_v19 }
 0x1aa   : > { %v2711_v18 = vpop.f32.mrf.mxu1  ;;  %1827 = vrcp.f32 %v884_v50  ;;  %v1806_v26 = vpop.eup %1805  ;;  %v886_v52 = vadd.f32 1.0, %v1804_v21 }
 0x1ab   : > { %1829 = vrcp.f32 %v879_v16  ;;  %v1808_v30 = vpop.eup %1807  ;;  %v881_v32 = vadd.f32 1.0, %v1806_v26 }
 0x1ac   : > { %v2713_v59 = vpop.f32.mrf.mxu1  ;;  %1831 = vpow2.f32 %v1501_v14  ;;  %v1810_v35 = vpop.eup %1809  ;;  %v887_v1 = vadd.f32 1.0, %v1808_v30  ;;  %v1504_v14 = vmul.f32 -1.442695, %v2662_v27 }
 0x1ad   : > { %1833 = vrcp.f32 %v880_v23  ;;  %v1812_v38 = vpop.eup %1811  ;;  %v882_v62 = vadd.f32 1.0, %v1810_v35 }
 0x1ae   : > { %v2716_v33 = vpop.f32.mrf.mxu1  ;;  %1835 = vrcp.f32 %v885_v56  ;;  %v1814_v41 = vpop.eup %1813 }
 0x1af   : > { %1837 = vrcp.f32 %v881_v32  ;;  %v1816_v42 = vpop.eup %1815  ;;  %v883_v44 = vadd.f32 1.0, %v1814_v41 }
 0x1b0   : > { %v2719_v40 = vpop.f32.mrf.mxu1  ;;  %1839 = vpow2.f32 %v1503_v28  ;;  %v889_v60 = vadd.f32 1.0, %v1816_v42 }
 0x1b1   : > { %1841 = vrcp.f32 %v882_v62 }
 0x1b2   : > { %v2722_v45 = vpop.f32.mrf.mxu1  ;;  %v1818_v47 = vpop.eup %1817  ;;  %1843 = vpow2.f32 %v1500_v37 }
 0x1b3   : > { %v1820_v49 = vpop.eup %1819  ;;  %1845 = vrcp.f32 %v883_v44  ;;  %v972_v7 = vmul.f32 %v1818_v47, %v2648_v11  ;;  %v888_v11 = vadd.f32 1.0, %v1812_v38 }
 0x1b4   : > { %v2725_v57 = vpop.f32.mrf.mxu1  ;;  %v1822_v4 = vpop.eup %1821  ;;  %1847 = vrcp.f32 %v887_v1  ;;  %v890_v47 = vadd.f32 1.0, %v1820_v49 }
 0x1b5   : > { %v1824_v2 = vpop.eup %1823  ;;  %v973_v50 = vmul.f32 %v1822_v4, %v2652_v15  ;;  %1849 = vpow2.f32 %v1505_v43  ;;  %v1004_v23 = vmul.f32 %v972_v7, %v2703_v55 }
 0x1b6   : > { %v727_v53 = vpop.f32.mrf.mxu1  ;;  %v1826_v12 = vpop.eup %1825  ;;  %1851 = vpow2.f32 %v1502_v48  ;;  %v891_v28 = vadd.f32 1.0, %v1824_v2 }
 0x1b7   : > { %v2731_v16 = vpop.eup %1827  ;;  %1853 = vrcp.f32 %v886_v52  ;;  %v1005_v19 = vmul.f32 %v973_v50, %v2706_v63  ;;  %v974_v15 = vmul.f32 %v1826_v12, %v2658_v22  ;;  %v1506_v63 = vmul.f32 -1.442695, %v2668_v34 }
 0x1b8   : > { %v2734_v56 = vpop.f32.mrf.mxu1  ;;  %v1830_v21 = vpop.eup %1829  ;;  %1855 = vrcp.f32 %v889_v60 }
 0x1b9   : > { %v1832_v26 = vpop.eup %1831  ;;  %v975_v30 = vmul.f32 %v1830_v21, %v2664_v29  ;;  %1857 = vpow2.f32 %v1507_v8  ;;  %1160 = vmatprep.mubr.f32.mxu0 %v1005_v19  ;;  %v1006_v41 = vmul.f32 %v974_v15, %v2708_v10 }
 0x1ba   : > { %v733_v32 = vpop.f32.mrf.mxu1  ;;  %v1834_v35 = vpop.eup %1833  ;;  %1859 = vpow2.f32 %v1504_v14  ;;  %1161 = vmatmul.mubr.f32.gmra.mxu0 %v1004_v23  ;;  %v893_v1 = vadd.f32 1.0, %v1832_v26  ;;  %v980_v23 = vmul.f32 %v2731_v16, %v2610_v51 }
 0x1bb   : > { %v1836_v37 = vpop.eup %1835  ;;  %v1007_v38 = vmul.f32 %v975_v30, %v2711_v18  ;;  %1861 = vrcp.f32 %v888_v11  ;;  %v976_v55 = vmul.f32 %v1834_v35, %v2670_v36 }
 0x1bc   : > { %v2741_v62 = vpop.f32.mrf.mxu1  ;;  %v1838_v22 = vpop.eup %1837  ;;  %1863 = vrcp.f32 %v891_v28  ;;  %v981_v7 = vmul.f32 %v1836_v37, %v2615_v54  ;;  %v1012_v28 = vmul.f32 %v980_v23, %v2725_v57  ;;  %v1030_v23 = vld [vmem:[#allocation2 + $0x58] sm:$0xff] }
 0x1bd   : > { %v1840_v29 = vpop.eup %1839  ;;  %v977_v42 = vmul.f32 %v1838_v22, %v2678_v46  ;;  %1165 = vmatprep.mubr.f32.mxu0 %v1007_v38  ;;  %1865 = vpow2.f32 %v1506_v63  ;;  %v1008_v10 = vmul.f32 %v976_v55, %v2713_v59 }
 0x1be   : > { %v739_v43 = vpop.f32.mrf.mxu1  ;;  %v1842_v44 = vpop.eup %1841  ;;  %1166 = vmatmul.mubr.f32.gmra.mxu0 %v1006_v41  ;;  %1867 = vrcp.f32 %v893_v1  ;;  %v895_v46 = vadd.f32 1.0, %v1840_v29  ;;  %v1013_v14 = vmul.f32 %v981_v7, %v727_v53 }
 0x1bf   : > { %v1844_v18 = vpop.eup %1843  ;;  %v1009_v48 = vmul.f32 %v977_v42, %v2716_v33  ;;  %v978_v36 = vmul.f32 %v1842_v44, %v2685_v5  ;;  %1869 = vrcp.f32 %v890_v47 }
 0x1c0   : > { %v2747_v52 = vpop.f32.mrf.mxu1  ;;  %v1846_v4 = vpop.eup %1845  ;;  %v892_v8 = vadd.f32 1.0, %v1844_v18  ;;  %1871 = vrcp.f32 %v895_v46 }
 0x1c1   : > { %v1848_v60 = vpop.eup %1847  ;;  %v979_v2 = vmul.f32 %v1846_v4, %v2693_v25  ;;  %1170 = vmatprep.mubr.f32.mxu0 %v1009_v48  ;;  %v1010_v59 = vmul.f32 %v978_v36, %v2719_v40 }
 0x1c2   : > { %v745_v49 = vpop.f32.mrf.mxu1  ;;  %v1850_v50 = vpop.eup %1849  ;;  %1171 = vmatmul.mubr.f32.gmra.mxu0 %v1008_v10  ;;  %v983_v54 = vmul.f32 %v1848_v60, %v2626_v61  ;;  %1873 = vrcp.f32 %v892_v8 }
 0x1c3   : > { %v1852_v33 = vpop.eup %1851  ;;  %v1011_v12 = vmul.f32 %v979_v2, %v2722_v45  ;;  %v897_v11 = vadd.f32 1.0, %v1850_v50 }
 0x1c4   : > { %v749_v5 = vpop.f32.mrf.mxu1  ;;  %v1854_v19 = vpop.eup %1853  ;;  %v894_v26 = vadd.f32 1.0, %v1852_v33  ;;  %v1015_v53 = vmul.f32 %v983_v54, %v733_v32 }
 0x1c5   : > { %v1856_v21 = vpop.eup %1855  ;;  %1175 = vmatprep.mubr.f32.mxu0 %v1011_v12  ;;  %1875 = vrcp.f32 %v897_v11  ;;  %v982_v37 = vmul.f32 %v1854_v19, %v2621_v58 }
 0x1c6   : > { %v751_v25 = vpop.f32.mrf.mxu1  ;;  %v1858_v15 = vpop.eup %1857  ;;  %1176 = vmatmul.mubr.f32.gmra.mxu0 %v1010_v59  ;;  %v985_v61 = vmul.f32 %v1856_v21, %v2636_v3  ;;  %1877 = vrcp.f32 %v894_v26 }
 0x1c7   : > { %v1860_v45 = vpop.eup %1859  ;;  %1180 = vmatprep.mubr.f32.mxu0 %v1013_v14  ;;  %v899_v35 = vadd.f32 1.0, %v1858_v15  ;;  %v1014_v22 = vmul.f32 %v982_v37, %v2734_v56 }
 0x1c8   : > { %v755_v40 = vpop.f32.mrf.mxu1  ;;  %v1862_v30 = vpop.eup %1861  ;;  %v896_v38 = vadd.f32 1.0, %v1860_v45  ;;  %v1017_v16 = vmul.f32 %v985_v61, %v739_v43 }
 0x1c9   : > { %v1864_v63 = vpop.eup %1863  ;;  %1879 = vrcp.f32 %v899_v35  ;;  %v984_v3 = vmul.f32 %v1862_v30, %v2631_v0 }
 0x1ca   : > { %1181 = vmatmul.mubr.f32.gmra.mxu0 %v1012_v28  ;;  %v1866_v51 = vpop.eup %1865  ;;  %v757_v32 = vpop.f32.mrf.mxu1  ;;  %v987_v57 = vmul.f32 %v1864_v63, %v2646_v9  ;;  %1881 = vrcp.f32 %v896_v38  ;;  %v1031_v28 = vld [vmem:[#allocation2 + $0x18] sm:$0xff]  ;;  %v1032_v63 = vld [vmem:[#allocation2 + $0x50] sm:$0xff] }
 0x1cb   : > { %1185 = vmatprep.mubr.f32.mxu0 %v1015_v53  ;;  %v1868_v55 = vpop.eup %1867  ;;  %v898_v41 = vadd.f32 1.0, %v1866_v51  ;;  %v1016_v1 = vmul.f32 %v984_v3, %v2741_v62 }
 0x1cc   : > { %v1870_v29 = vpop.eup %1869  ;;  %v1019_v58 = vmul.f32 %v987_v57, %v745_v49  ;;  %v761_v42 = vpop.f32.mrf.mxu1  ;;  %v989_v43 = vmul.f32 %v1868_v55, %v2654_v17 }
 0x1cd   : > { %v1872_v44 = vpop.eup %1871  ;;  %v986_v56 = vmul.f32 %v1870_v29, %v2641_v6  ;;  %1883 = vrcp.f32 %v898_v41  ;;  %v1034_v41 = vld [vmem:[#allocation2 + $0x8] sm:$0xff] }
 0x1ce   : > { %1186 = vmatmul.mubr.f32.gmra.mxu0 %v1014_v22  ;;  %v1021_v47 = vmul.f32 %v989_v43, %v751_v25  ;;  %v763_v18 = vpop.f32.mrf.mxu1  ;;  %v991_v48 = vmul.f32 %v1872_v44, %v2660_v24  ;;  %v1033_v22 = vld [vmem:[#allocation2 + $0x68] sm:$0xff] }
 0x1cf   : > { %1190 = vmatprep.mubr.f32.mxu0 %v1017_v16  ;;  %v1874_v9 = vpop.eup %1873  ;;  %v1018_v0 = vmul.f32 %v986_v56, %v2747_v52  ;;  %v1035_v43 = vld [vmem:[#allocation2 + $0x48] sm:$0xff] }
 0x1d0   : > { %v988_v36 = vmul.f32 %v1874_v9, %v2650_v13  ;;  %v1023_v17 = vmul.f32 %v991_v48, %v757_v32  ;;  %v767_v60 = vpop.f32.mrf.mxu1 }
 0x1d2   : > { %1191 = vmatmul.mubr.f32.gmra.mxu0 %v1016_v1  ;;  %v1876_v4 = vpop.eup %1875  ;;  %v1020_v10 = vmul.f32 %v988_v36, %v749_v5  ;;  %v769_v24 = vpop.f32.mrf.mxu1  ;;  %v1028_v5 = vld [vmem:[#allocation2 + $0x30] sm:$0xff] }
 0x1d3   : > { %1195 = vmatprep.mubr.f32.mxu0 %v1019_v58  ;;  %v1878_v62 = vpop.eup %1877  ;;  %v993_v6 = vmul.f32 %v1876_v4, %v2666_v31 }
 0x1d4   : > { %v990_v46 = vmul.f32 %v1878_v62, %v2656_v20  ;;  %v1037_v62 = vld [vmem:[#allocation2 + $0x20] sm:$0xff] }
 0x1d5   : > { %v1025_v52 = vmul.f32 %v993_v6, %v763_v18 }
 0x1d6   : > { %1196 = vmatmul.mubr.f32.gmra.mxu0 %v1018_v0  ;;  %v1880_v7 = vpop.eup %1879  ;;  %v1022_v49 = vmul.f32 %v990_v46, %v755_v40  ;;  %v1036_v0 = vld [vmem:[#allocation2 + $0x40] sm:$0xff] }
 0x1d7   : > { %1200 = vmatprep.mubr.f32.mxu0 %v1021_v47  ;;  %v1882_v2 = vpop.eup %1881  ;;  %v995_v50 = vmul.f32 %v1880_v7, %v2673_v39  ;;  %v1029_v39 = vld [vmem:[#allocation2] sm:$0xff]  ;;  %v1038_v7 = vld [vmem:[#allocation2 + $0x10] sm:$0xff] }
 0x1d8   : > { %v992_v13 = vmul.f32 %v1882_v2, %v2662_v27 }
 0x1d9   : > { %v1027_v33 = vmul.f32 %v995_v50, %v769_v24  ;;  %v1039_v24 = vld [vmem:[#allocation2 + $0x38] sm:$0xff] }
 0x1da   : > { %1201 = vmatmul.mubr.f32.gmra.mxu0 %v1020_v10  ;;  %v1884_v8 = vpop.eup %1883  ;;  %v1024_v12 = vmul.f32 %v992_v13, %v761_v42 }
 0x1db   : > { %1205 = vmatprep.mubr.f32.mxu0 %v1023_v17  ;;  %v994_v31 = vmul.f32 %v1884_v8, %v2668_v34 }
 0x1dd   : > { %v1026_v20 = vmul.f32 %v994_v31, %v767_v60 }
 0x1de   : > { %1206 = vmatmul.mubr.f32.gmra.mxu0 %v1022_v49 }
 0x1df   : > { %1210 = vmatprep.mubr.f32.mxu0 %v1025_v52 }
 0x1e2   : > { %1211 = vmatmul.mubr.f32.gmra.mxu0 %v1024_v12  ;;  %v1040_v12 = vld [vmem:[#allocation2 + $0x60] sm:$0xff] }
 0x1e3   : > { %1215 = vmatprep.mubr.f32.mxu0 %v1027_v33 }
 0x1e6   : > { %1216 = vmatmul.mubr.f32.gmra.mxu0 %v1026_v20 }
 0x25b   : > { %v1551_v14 = vpop.f32.mrf.mxu0 }
 0x25d   : > { %v1552_v19 = vpop.f32.mrf.mxu0 }
 0x25e   : > { %v1553_v59 = vadd.f32 %v1552_v19, %v1551_v14  ;;  %v1041_v19 = vld [vmem:[#allocation2 + $0x70] sm:$0xff] }
 0x25f   : > { %v1554_v21 = vpop.f32.mrf.mxu0 }
 0x260   : > { %v1221_v54 = vadd.f32 %v1553_v59, %v1028_v5 }
 0x261   : > { %v1555_v11 = vpop.f32.mrf.mxu0 }
 0x262   : > { %1237 = vst [vmem:[#allocation2 + $0x30] sm:$0xff] %v1221_v54  ;;  %v1556_v27 = vadd.f32 %v1555_v11, %v1554_v21  ;;  %v1042_v11 = vld [vmem:[#allocation2 + $0x78] sm:$0xff] }
 0x263   : > { %v1557_v25 = vpop.f32.mrf.mxu0 }
 0x264   : > { %v1222_v15 = vadd.f32 %v1556_v27, %v1029_v39 }
 0x265   : > { %v1558_v26 = vpop.f32.mrf.mxu0 }
 0x266   : > { %1238 = vst [vmem:[#allocation2] sm:$0xff] %v1222_v15  ;;  %v1559_v34 = vadd.f32 %v1558_v26, %v1557_v25  ;;  %v1043_v26 = vld [vmem:[#allocation2 + $0x28] sm:$0xff] }
 0x267   : > { %v1560_v45 = vpop.f32.mrf.mxu0 }
 0x268   : > { %v1223_v53 = vadd.f32 %v1559_v34, %v1030_v23 }
 0x269   : > { %v1561_v40 = vpop.f32.mrf.mxu0 }
 0x26a   : > { %1239 = vst [vmem:[#allocation2 + $0x58] sm:$0xff] %v1223_v53  ;;  %v1562_v30 = vadd.f32 %v1561_v40, %v1560_v45 }
 0x26c   : > { %v1224_v61 = vadd.f32 %v1562_v30, %v1031_v28 }
 0x26e   : > { %1240 = vst [vmem:[#allocation2 + $0x18] sm:$0xff] %v1224_v61 }
 0x27a   : > { %v1563_v35 = vpop.f32.mrf.mxu0 }
 0x27c   : > { %v1564_v37 = vpop.f32.mrf.mxu0 }
 0x27d   : > { %v1565_v38 = vadd.f32 %v1564_v37, %v1563_v35 }
 0x27e   : > { %v1566_v51 = vpop.f32.mrf.mxu0 }
 0x27f   : > { %v1225_v16 = vadd.f32 %v1565_v38, %v1032_v63 }
 0x280   : > { %v1567_v32 = vpop.f32.mrf.mxu0 }
 0x281   : > { %1241 = vst [vmem:[#allocation2 + $0x50] sm:$0xff] %v1225_v16  ;;  %v1568_v57 = vadd.f32 %v1567_v32, %v1566_v51 }
 0x282   : > { %v1569_v55 = vpop.f32.mrf.mxu0 }
 0x283   : > { %v1226_v3 = vadd.f32 %v1568_v57, %v1033_v22 }
 0x284   : > { %v1570_v29 = vpop.f32.mrf.mxu0 }
 0x285   : > { %1242 = vst [vmem:[#allocation2 + $0x68] sm:$0xff] %v1226_v3  ;;  %v1571_v58 = vadd.f32 %v1570_v29, %v1569_v55 }
 0x286   : > { %v1572_v1 = vpop.f32.mrf.mxu0 }
 0x287   : > { %v1227_v42 = vadd.f32 %v1571_v58, %v1034_v41 }
 0x288   : > { %v1573_v44 = vpop.f32.mrf.mxu0 }
 0x289   : > { %1243 = vst [vmem:[#allocation2 + $0x8] sm:$0xff] %v1227_v42  ;;  %v1574_v56 = vadd.f32 %v1573_v44, %v1572_v1 }
 0x28a   : > { %v1575_v9 = vpop.f32.mrf.mxu0 }
 0x28b   : > { %v1228_v47 = vadd.f32 %v1574_v56, %v1035_v43 }
 0x28c   : > { %v1576_v18 = vpop.f32.mrf.mxu0 }
 0x28d   : > { %1244 = vst [vmem:[#allocation2 + $0x48] sm:$0xff] %v1228_v47  ;;  %v1577_v48 = vadd.f32 %v1576_v18, %v1575_v9 }
 0x28e   : > { %v1578_v4 = vpop.f32.mrf.mxu0 }
 0x28f   : > { %v1229_v36 = vadd.f32 %v1577_v48, %v1036_v0 }
 0x290   : > { %v1579_v17 = vpop.f32.mrf.mxu0 }
 0x291   : > { %1245 = vst [vmem:[#allocation2 + $0x40] sm:$0xff] %v1229_v36  ;;  %v1580_v10 = vadd.f32 %v1579_v17, %v1578_v4 }
 0x292   : > { %v1581_v60 = vpop.f32.mrf.mxu0 }
 0x293   : > { %v1230_v6 = vadd.f32 %v1580_v10, %v1037_v62 }
 0x294   : > { %v1582_v46 = vpop.f32.mrf.mxu0 }
 0x295   : > { %1246 = vst [vmem:[#allocation2 + $0x20] sm:$0xff] %v1230_v6  ;;  %v1583_v2 = vadd.f32 %v1582_v46, %v1581_v60 }
 0x296   : > { %v1584_v52 = vpop.f32.mrf.mxu0 }
 0x297   : > { %v1231_v49 = vadd.f32 %v1583_v2, %v1038_v7 }
 0x298   : > { %v1585_v50 = vpop.f32.mrf.mxu0 }
 0x299   : > { %1247 = vst [vmem:[#allocation2 + $0x10] sm:$0xff] %v1231_v49  ;;  %v1586_v13 = vadd.f32 %v1585_v50, %v1584_v52 }
 0x29a   : > { %v1587_v8 = vpop.f32.mrf.mxu0 }
 0x29b   : > { %v1232_v33 = vadd.f32 %v1586_v13, %v1039_v24 }
 0x29c   : > { %v1588_v31 = vpop.f32.mrf.mxu0 }
 0x29d   : > { %1248 = vst [vmem:[#allocation2 + $0x38] sm:$0xff] %v1232_v33  ;;  %v1589_v20 = vadd.f32 %v1588_v31, %v1587_v8 }
 0x29e   : > { %v1590_v14 = vpop.f32.mrf.mxu0 }
 0x29f   : > { %v1233_v5 = vadd.f32 %v1589_v20, %v1040_v12 }
 0x2a0   : > { %v1591_v59 = vpop.f32.mrf.mxu0 }
 0x2a1   : > { %1249 = vst [vmem:[#allocation2 + $0x60] sm:$0xff] %v1233_v5  ;;  %v1592_v21 = vadd.f32 %v1591_v59, %v1590_v14 }
 0x2a2   : > { %v1593_v54 = vpop.f32.mrf.mxu0 }
 0x2a3   : > { %v1234_v39 = vadd.f32 %v1592_v21, %v1041_v19 }
 0x2a4   : > { %v1594_v27 = vpop.f32.mrf.mxu0 }
 0x2a5   : > { %1250 = vst [vmem:[#allocation2 + $0x70] sm:$0xff] %v1234_v39  ;;  %v1595_v25 = vadd.f32 %v1594_v27, %v1593_v54 }
 0x2a6   : > { %v1596_v15 = vpop.f32.mrf.mxu0 }
 0x2a7   : > { %v1235_v23 = vadd.f32 %v1595_v25, %v1042_v11 }
 0x2a8   : > { %v1597_v34 = vpop.f32.mrf.mxu0 }
 0x2a9   : > { %1251 = vst [vmem:[#allocation2 + $0x78] sm:$0xff] %v1235_v23  ;;  %v1598_v45 = vadd.f32 %v1597_v34, %v1596_v15  ;;  %1256 = sbr.rel (%p1508_p10) target bundleno = 695 (0x2b7), region = 60 }
 0x2ab   : > { %v1236_v53 = vadd.f32 %v1598_v45, %v1043_v26 }
 0x2ad   : > { %1252 = vst [vmem:[#allocation2 + $0x28] sm:$0xff] %v1236_v53 }
 0x2ae   : > { %v1257_v28 = vld [vmem:[#allocation2 + $0x30] sm:$0xff]  ;;  %v1258_v40 = vld [vmem:[#allocation2] sm:$0xff]  ;;  %v1259_v30 = vld [vmem:[#allocation2 + $0x58] sm:$0xff] }
 0x2af   : > { %1273 = vst [vmem:[%s2413_s29] sm:$0xff] %v1257_v28  ;;  %1274 = vst [vmem:[%s2413_s29 + $0x8] sm:$0xff] %v1258_v40  ;;  %v1260_v61 = vld [vmem:[#allocation2 + $0x18] sm:$0xff]  ;;  %v1261_v35 = vld [vmem:[#allocation2 + $0x50] sm:$0xff] }
 0x2b0   : > { %1275 = vst [vmem:[%s2413_s29 + $0x10] sm:$0xff] %v1259_v30  ;;  %v1262_v63 = vld [vmem:[#allocation2 + $0x68] sm:$0xff]  ;;  %1276 = vst [vmem:[%s2413_s29 + $0x18] sm:$0xff] %v1260_v61  ;;  %v1265_v51 = vld [vmem:[#allocation2 + $0x40] sm:$0xff] }
 0x2b1   : > { %1277 = vst [vmem:[%s2413_s29 + $0x20] sm:$0xff] %v1261_v35  ;;  %1278 = vst [vmem:[%s2413_s29 + $0x28] sm:$0xff] %v1262_v63  ;;  %v1263_v37 = vld [vmem:[#allocation2 + $0x8] sm:$0xff]  ;;  %v1266_v16 = vld [vmem:[#allocation2 + $0x20] sm:$0xff] }
 0x2b2   : > { %v1264_v38 = vld [vmem:[#allocation2 + $0x48] sm:$0xff]  ;;  %1279 = vst [vmem:[%s2413_s29 + $0x30] sm:$0xff] %v1263_v37  ;;  %1281 = vst [vmem:[%s2413_s29 + $0x40] sm:$0xff] %v1265_v51  ;;  %v1267_v22 = vld [vmem:[#allocation2 + $0x10] sm:$0xff] }
 0x2b3   : > { %1280 = vst [vmem:[%s2413_s29 + $0x38] sm:$0xff] %v1264_v38  ;;  %v1268_v32 = vld [vmem:[#allocation2 + $0x38] sm:$0xff]  ;;  %1282 = vst [vmem:[%s2413_s29 + $0x48] sm:$0xff] %v1266_v16  ;;  %v1269_v57 = vld [vmem:[#allocation2 + $0x60] sm:$0xff] }
 0x2b4   : > { %1283 = vst [vmem:[%s2413_s29 + $0x50] sm:$0xff] %v1267_v22  ;;  %1284 = vst [vmem:[%s2413_s29 + $0x58] sm:$0xff] %v1268_v32  ;;  %v1270_v55 = vld [vmem:[#allocation2 + $0x70] sm:$0xff]  ;;  %v1271_v3 = vld [vmem:[#allocation2 + $0x78] sm:$0xff] }
 0x2b5   : > { %1285 = vst [vmem:[%s2413_s29 + $0x60] sm:$0xff] %v1269_v57  ;;  %1286 = vst [vmem:[%s2413_s29 + $0x68] sm:$0xff] %v1270_v55  ;;  %v1272_v41 = vld [vmem:[#allocation2 + $0x28] sm:$0xff] }
 0x2b6   : > { %1287 = vst [vmem:[%s2413_s29 + $0x70] sm:$0xff] %v1271_v3  ;;  %1288 = vst [vmem:[%s2413_s29 + $0x78] sm:$0xff] %v1272_v41 }
 0x2b7 PF: > { %s2920_s9 = sld [smem:[#allocation18_spill]]  ;;  %s1303_s26 = sshll.u32 %s2413_s29, 4  ;;  %s2799_s26 = int_to_ptr.vmem [resolvable:$true] %s1303_s26 }
 0x2b8   : > { %s2921_s11 = sld [smem:[#allocation24_spill]]  ;;  %s1290_s5 = scalar_lea.sflag [#allocation5], %s2387_s7 }
 0x2b9   : > { %s2922_s8 = sld [smem:[#allocation29_spill]]  ;;  %s1997_s0 = scalar_lea.vmem %s2799_s26, 2048 }
 0x2ba   : > { %p1998_p1 = scmp.ne.s32.totalorder %s2799_s26, %s1997_s0  ;;  %s2138_s20 = smov [#allocation11]  }
 0x2bb   : > { %s2001_s23 = sshll.u32 %s2138_s20, 4  ;;  %s2002_s23 = int_to_ptr.vmem [resolvable:$false] %s2001_s23 }
 0x2bc   : > { %s2003_s14 = scalar_lea.vmem %s2002_s23, 4096  ;;  %p2004_p11 = scmp.lt.s32.totalorder %s2799_s26, %s2002_s23 }
 0x2bd   : > { %s1518_s13 = sshll.u32 %s2920_s9, 11  ;;  %p2005_p2 = scmp.lt.s32.totalorder %s2003_s14, %s1997_s0 }
 0x2be   : > { %p2923_p6 = scmp.ne.s32.totalorder %s2921_s11, 0 }
 0x2bf   : > { %s2796_s4 = scalar_lea.hbm %s2922_s8, %s1518_s13  ;;  %p2006_p3 = por %p2005_p2, %p2004_p11 }
 0x2c0   : > { %p1999_p0 = pnand %p1998_p1, %p2923_p6 }
 0x2c2   : > { %p2000_p9 = pneg %p1999_p0 }
 0x2c4   : > { %p2007_p5 = pnand %p2006_p3, %p2000_p9 }
 0x2c6   : > { %2010 = shalt.err (!%p2007_p5)
}
 0x2c7   : > { %s2011_s28 = scalar_lea.hbm %s2796_s4, 2048  ;;  %s2015_s24 = scalar_lea.hbm %s2922_s8, 4096 }
 0x2c8   : > { %p2012_p12 = scmp.ne.s32.totalorder %s2796_s4, %s2011_s28  ;;  %p2016_p4 = scmp.lt.s32.totalorder %s2796_s4, %s2922_s8 }
 0x2c9   : > { %p2017_p7 = scmp.lt.s32.totalorder %s2015_s24, %s2011_s28 }
 0x2ca   : > { %p2013_p8 = pnand %p2012_p12, %p2923_p6 }
 0x2cb   : > { %p2018_p10 = por %p2017_p7, %p2016_p4 }
 0x2cc   : > { %p2014_p13 = pneg %p2013_p8 }
 0x2ce   : > { %p2019_p1 = pnand %p2018_p10, %p2014_p13 }
 0x2d0   : > { %2022 = shalt.err (!%p2019_p1)
}
 0x2d1   : > { %s2139_s27 = smov 128   ;;  %s2140_s29 = smov 8  }
 0x2d2   : > { %1639 = dma.vmem_to_hbm [thread:$0]  (%p2923_p6), %s2799_s26, 2048, %s2796_s4, %s1290_s5, %s2139_s27, %s2139_s27, %s2140_s29  }
 0x2d3 PF: > { %p1659_p0 = scmp.ge.s32.totalorder %s2125_s25, 2  ;;  %s1318_s10 = sand.u32 1, %s2097_s18  }
 0x2d4   : > { %p2924_p9 = scmp.ne.s32.totalorder %s2906_s6, 0  ;;  %s1319_s12 = scalar_lea.sflag [#allocation5], %s1318_s10 }
 0x2d6   : > { %p1655_p11 = pnand %p1659_p0, %p2924_p9 }
 0x2d8   : > { %p1656_p2 = pneg %p1655_p11 }
 0x2da   : > { %2080 = dma.done.wait (%p1656_p2), %s1319_s12, 2048  }
 0x2db   : > { %2082 = vsyncadd (%p1656_p2), %s1319_s12, 4294965248  ;;  %s26_s25 = sadd.s32 1, %s2125_s25   ;;  %s2925_s9 = sld [smem:[#allocation22_spill]] }
 0x2dc   : > { %p23_p3 = scmp.ge.s32.totalorder %s26_s25, 6   ;;  %s2926_s7 = sld [smem:[#allocation16_spill]] }
 0x2dd   : > { %s2927_s20 = sld [smem:[#allocation25_spill]]  ;;  %s2932_s15 = smov %s2089_s16 }
 0x2de   : > { %s2928_s21 = sld [smem:[#allocation19_spill]]  ;;  %s2933_s16 = smov %s2093_s17 }
 0x2df   : > { %s2929_s22 = sld [smem:[#allocation20_spill]]  ;;  %s2935_s18 = smov %s2101_s19 }
 0x2e0   : > { %s2930_s23 = sld [smem:[#allocation21_spill]]  ;;  %25 = sbr.rel (!%p23_p3) target bundleno = 18 (0x12), region = 126 }
 0x2e1   : > { %s2931_s24 = sld [smem:[#allocation23_spill]]  ;;  %s2934_s17 = smov %s2925_s9 }
 0x2e2   : > { %s2936_s19 = smov %s2926_s7 }
 0x2e5   :  { %1324 = vsyncpa [#allocation4], 1 }
 0x2e6   :  { %1326 = vsyncpa [#allocation4 + $0x1], 1 }
 0x2e7   :  { %1327 = vsyncpa [#allocation7], 1 }
 0x2e8   :  { %1329 = vsyncpa [#allocation7 + $0x1], 1 }
 0x2e9   :  { %1330 = vsyncpa [#allocation10], 1 }
 0x2ea   :  { %1332 = vsyncpa [#allocation10 + $0x1], 1 }
 0x2eb   :  { %1333 = vsyncpa [#allocation5], 1 }
 0x2ec   :  { %1335 = vsyncpa [#allocation5 + $0x1], 1 }

</bundles_post_ra>
